<compile_context>
chip_gen: v6e
topology: v6e:2x2x1
jax: 0.10.0
libtpu: 0.0.40
codegen_flags: <defaults>
</compile_context>

<pallas_src>
import numpy as np
import jax
import jax.numpy as jnp
from jax.experimental import pallas as pl
from jax.experimental.pallas import tpu as pltpu


def _vmem_limit_bytes():
    """Generation-aware scoped-VMEM budget (v5e/v6e: 128 MiB chip, v7x: 64 MiB)."""
    cap = None
    try:
        info = pltpu.get_tpu_info()
        cap = getattr(info, "vmem_capacity_bytes", None)
    except Exception:
        cap = None
    if not cap:
        cap = 64 * 1024 * 1024          # conservative default (v7x-sized chip)
    return int(min(cap * 3 // 4, 100 * 1024 * 1024))


def roi_interp_pallas(x, rois, interp_height, interp_width, roi_block=32):
    """Per-ROI bilinear crop-and-resize on TPU.

    x:    (N, C, H, W) feature maps (one per ROI).
    rois: (N, 4) = (x1, y1, x2, y2) in feature-map pixel coordinates.
    Returns (N, C, OH, OW).
    """
    N, C, H, W = x.shape
    OH, OW = int(interp_height), int(interp_width)
    HW, OO = H * W, OH * OW
    if N == 0:
        return jnp.zeros((0, C, OH, OW), x.dtype)

    # ---- per-ROI affine sampling params (x1, dx, y1, dy); tiny, plain XLA ----
    rois_f = rois.astype(jnp.float32)
    inv_oh = 1.0 / float(max(OH - 1, 1))
    inv_ow = 1.0 / float(max(OW - 1, 1))
    rx1, ry1, rx2, ry2 = rois_f[:, 0], rois_f[:, 1], rois_f[:, 2], rois_f[:, 3]
    params = jnp.stack(
        [rx1, (rx2 - rx1) * inv_ow, ry1, (ry2 - ry1) * inv_oh],
        axis=-1)[:, None, :]                                   # (N, 1, 4)

    # ---- generation-aware VMEM budget and ROI block size ---------------------
    vmem_limit = _vmem_limit_bytes()
    # x block (dbl-buffered) + out block (dbl-buffered) + ~3 (B,HW,OO) f32 temps.
    per_roi_bytes = 4 * (2 * C * HW + 2 * C * OO + 3 * HW * OO)
    fixed_bytes = 2 * 4 * HW * OO * 4                          # resident grids
    budget = max(vmem_limit - fixed_bytes, per_roi_bytes)
    b_cap = max(1, int(budget * 0.6) // per_roi_bytes)
    B = int(min(roi_block, N, b_cap))
    if N > 1:                      # keep >= 2 blocks so v7x's 2 TCs both get work
        B = min(B, -(-N // 2))
    B = max(B, 1)
    n_blocks = -(-N // B)
    Npad = n_blocks * B
    if Npad > N:
        x = jnp.concatenate([x, jnp.zeros((Npad - N, C, H, W), x.dtype)], axis=0)
        params = jnp.concatenate(
            [params, jnp.zeros((Npad - N, 1, 4), params.dtype)], axis=0)

    # Pure minor-dim reshape (free): lane dim of the kernel block is H*W >= 128.
    x_flat = x.reshape(Npad, C, HW)

    # ---- constant index grids, built once host-side, resident in VMEM --------
    # row index r = h*W + w ; column index c = i*OW + j
    r_idx = np.arange(HW)
    c_idx = np.arange(OO)
    gi = np.broadcast_to((c_idx // OW)[None, :], (HW, OO))     # output row i
    gh = np.broadcast_to((r_idx // W)[:, None], (HW, OO))      # source row h
    gj = np.broadcast_to((c_idx % OW)[None, :], (HW, OO))      # output col j
    gw = np.broadcast_to((r_idx % W)[:, None], (HW, OO))       # source col w
    grids = jnp.asarray(np.stack([gi, gh, gj, gw]), dtype=jnp.float32)  # (4,HW,OO)

    hmax = float(H - 1)
    wmax = float(W - 1)

    def kernel(grids_ref, params_ref, x_ref, out_ref):
        # grids_ref:  VMEM (4, HW, OO) resident constant index grids
        # params_ref: VMEM (B, 1, 4)  per-ROI (x1, dx, y1, dy)
        # x_ref:      VMEM (B, C, HW) feature maps for this ROI block
        # out_ref:    VMEM (B, C, OO)
        p = params_ref[...]                                    # (B, 1, 4)
        px1, pdx = p[:, :, 0:1], p[:, :, 1:2]                  # (B, 1, 1) each
        py1, pdy = p[:, :, 2:3], p[:, :, 3:4]

        gi_ = grids_ref[0]                                     # (HW, OO)
        gh_ = grids_ref[1]
        gj_ = grids_ref[2]
        gw_ = grids_ref[3]

        # Combined bilinear weight Wcomb[b, (h,w), (i,j)] = wy[b,i,h]*wx[b,j,w],
        # built as one vectorized f32 VPU expression over the whole ROI block.
        sy = jnp.clip(py1 + gi_ * pdy, 0.0, hmax)              # (B, HW, OO)
        wy = jnp.maximum(0.0, 1.0 - jnp.abs(sy - gh_))
        sx = jnp.clip(px1 + gj_ * pdx, 0.0, wmax)
        wx = jnp.maximum(0.0, 1.0 - jnp.abs(sx - gw_))
        wc = wy * wx                                           # (B, HW, OO) f32

        # Single MXU matmul per ROI: (C, HW) @ (HW, OO), batched over B only.
        # Natural (M,K)x(K,N) orientation; weights stay f32 for accuracy.
        xv = x_ref[...].astype(jnp.float32)                    # (B, C, HW)
        out = jax.lax.dot_general(
            xv, wc,
            dimension_numbers=(((2,), (1,)), ((0,), (0,))),
            preferred_element_type=jnp.float32)                # (B, C, OO)
        out_ref[...] = out.astype(out_ref.dtype)

    grid_spec = pltpu.PrefetchScalarGridSpec(
        num_scalar_prefetch=0,
        grid=(n_blocks,),
        in_specs=[
            pl.BlockSpec((4, HW, OO), lambda g: (0, 0, 0)),    # resident grids
            pl.BlockSpec((B, 1, 4), lambda g: (g, 0, 0)),      # ROI params
            pl.BlockSpec((B, C, HW), lambda g: (g, 0, 0)),     # features
        ],
        out_specs=pl.BlockSpec((B, C, OO), lambda g: (g, 0, 0)),
    )

    out_flat = pl.pallas_call(
        kernel,
        out_shape=jax.ShapeDtypeStruct((Npad, C, OO), x.dtype),
        grid_spec=grid_spec,
        compiler_params=pltpu.CompilerParams(
            dimension_semantics=("parallel",),     # disjoint ROI blocks -> megacore
            vmem_limit_bytes=int(vmem_limit)),
    )(grids, params, x_flat)

    # Drop ROI padding; splitting the minor dim back to (OH, OW) is free XLA.
    return out_flat[:N].reshape(N, C, OH, OW)


def roi_interp_forward(x, rois, interp_height, interp_width, pad_input=0):
    """Full RoIInterp.forward: ROI filtering + replication around the Pallas kernel."""
    # Data-dependent batch filtering (mirrors the host-side `.data` check in PyTorch).
    # TODO(synk): this forces a host sync exactly like the original module; it cannot
    # live inside a jitted/Pallas region.
    OH, OW = int(interp_height), int(interp_width)
    rois_np = np.asarray(rois)
    keep = [i for i in range(x.shape[0])
            if not (rois_np[i, 0] == 0 and rois_np[i, 2] == 0)]
    if not keep:
        return jnp.zeros((0, x.shape[1], OH, OW), x.dtype)
    n_keep = len(keep)

    # Bucket the kept count to a power of two so distinct keep-counts do not each
    # trigger a fresh Mosaic compile (recompiles dominate a microsecond kernel).
    bucket = 2
    while bucket < n_keep:
        bucket *= 2
    keep_idx = jnp.asarray(keep + [keep[0]] * (bucket - n_keep), dtype=jnp.int32)
    x_sel = jnp.take(x, keep_idx, axis=0)
    r_sel = jnp.take(jnp.asarray(rois), keep_idx, axis=0)

    out = roi_interp_pallas(x_sel, r_sel, OH, OW)[:n_keep]

    # torch.cat of `pad_input` identical copies == compute once + tile the output.
    reps = max(1, int(pad_input))
    if reps > 1:
        out = jnp.tile(out, (reps, 1, 1, 1))
    return out


def _reference(x, rois, OH, OW):
    x = np.asarray(x, np.float32)
    rois = np.asarray(rois, np.float32)
    N, C, H, W = x.shape
    outs = []
    for n in range(N):
        x1, y1, x2, y2 = rois[n]
        sy = np.clip(y1 + np.arange(OH) * (y2 - y1) / max(OH - 1, 1), 0, H - 1)
        sx = np.clip(x1 + np.arange(OW) * (x2 - x1) / max(OW - 1, 1), 0, W - 1)
        wy = np.maximum(0.0, 1.0 - np.abs(sy[:, None] - np.arange(H)[None, :]))
        wx = np.maximum(0.0, 1.0 - np.abs(sx[:, None] - np.arange(W)[None, :]))
        outs.append(np.einsum('ih,chw,jw->cij', wy, x[n], wx))
    return np.stack(outs)


if __name__ == "__main__":
    key = jax.random.PRNGKey(0)
    N, C, H, W = 4, 4, 16, 16
    interp_h, interp_w, pad_input = 8, 8, 2

    x = jax.random.normal(key, (N, C, H, W), dtype=jnp.float32)
    rois = jnp.array([[0.0, 0.0, 0.0, 0.0],        # invalid roi -> filtered out
                      [2.0, 1.5, 12.0, 10.5],
                      [0.5, 3.0, 14.5, 15.0],
                      [4.0, 4.0, 9.0, 13.0]], dtype=jnp.float32)

    out = roi_interp_forward(x, rois, interp_h, interp_w, pad_input)
    out = jax.block_until_ready(out)

    # Reference check on the same (filtered + replicated) inputs.
    keep = [1, 2, 3]
    x_ref_in = np.concatenate([np.asarray(x)[keep]] * pad_input, axis=0)
    r_ref_in = np.concatenate([np.asarray(rois)[keep]] * pad_input, axis=0)
    ref = _reference(x_ref_in, r_ref_in, interp_h, interp_w)

    assert out.shape == (len(keep) * pad_input, C, interp_h, interp_w), out.shape
    np.testing.assert_allclose(np.asarray(out), ref, rtol=1e-5, atol=1e-4)
    print("KERNEL_OK")
</pallas_src>

<mosaic_0001>
module attributes {stable_mosaic.version = 11 : i64} {
  func.func @kernel(%arg0: i32, %arg1: memref<4x256x64xf32, #tpu.memory_space<vmem>>, %arg2: memref<2x1x4xf32, #tpu.memory_space<vmem>>, %arg3: memref<2x4x256xf32, #tpu.memory_space<vmem>>, %arg4: memref<2x4x64xf32, #tpu.memory_space<vmem>>) attributes {dimension_semantics = [#tpu.dimension_semantics<parallel>], iteration_bounds = array<i64: 2>, scalar_prefetch = 0 : i64, scratch_operands = 0 : i64, tpu.core_type = #tpu.core_type<tc>, window_params = [{pipeline_mode = #tpu.pipeline_mode<synchronous>, transform_indices = @transform_0, window_bounds = array<i64: 4, 256, 64>}, {transform_indices = @transform_1, window_bounds = array<i64: 2, 1, 4>}, {transform_indices = @transform_2, window_bounds = array<i64: 2, 4, 256>}, {transform_indices = @transform_3, window_bounds = array<i64: 2, 4, 64>}]} {
    %c0 = arith.constant 0 : index
    %c0_0 = arith.constant 0 : index
    %c0_1 = arith.constant 0 : index
    %0 = vector.load %arg2[%c0, %c0_0, %c0_1] : memref<2x1x4xf32, #tpu.memory_space<vmem>>, vector<2x1x4xf32>
    %1 = vector.extract_strided_slice %0 {offsets = [0, 0, 0], sizes = [2, 1, 1], strides = [1, 1, 1]} : vector<2x1x4xf32> to vector<2x1x1xf32>
    %2 = vector.extract_strided_slice %0 {offsets = [0, 0, 1], sizes = [2, 1, 1], strides = [1, 1, 1]} : vector<2x1x4xf32> to vector<2x1x1xf32>
    %3 = vector.extract_strided_slice %0 {offsets = [0, 0, 2], sizes = [2, 1, 1], strides = [1, 1, 1]} : vector<2x1x4xf32> to vector<2x1x1xf32>
    %4 = vector.extract_strided_slice %0 {offsets = [0, 0, 3], sizes = [2, 1, 1], strides = [1, 1, 1]} : vector<2x1x4xf32> to vector<2x1x1xf32>
    %c0_2 = arith.constant 0 : index
    %c0_3 = arith.constant 0 : index
    %c0_4 = arith.constant 0 : index
    %5 = vector.load %arg1[%c0_2, %c0_3, %c0_4] : memref<4x256x64xf32, #tpu.memory_space<vmem>>, vector<1x256x64xf32>
    %6 = vector.shape_cast %5 : vector<1x256x64xf32> to vector<256x64xf32>
    %c1 = arith.constant 1 : index
    %c0_5 = arith.constant 0 : index
    %c0_6 = arith.constant 0 : index
    %7 = vector.load %arg1[%c1, %c0_5, %c0_6] : memref<4x256x64xf32, #tpu.memory_space<vmem>>, vector<1x256x64xf32>
    %8 = vector.shape_cast %7 : vector<1x256x64xf32> to vector<256x64xf32>
    %c2 = arith.constant 2 : index
    %c0_7 = arith.constant 0 : index
    %c0_8 = arith.constant 0 : index
    %9 = vector.load %arg1[%c2, %c0_7, %c0_8] : memref<4x256x64xf32, #tpu.memory_space<vmem>>, vector<1x256x64xf32>
    %10 = vector.shape_cast %9 : vector<1x256x64xf32> to vector<256x64xf32>
    %c3 = arith.constant 3 : index
    %c0_9 = arith.constant 0 : index
    %c0_10 = arith.constant 0 : index
    %11 = vector.load %arg1[%c3, %c0_9, %c0_10] : memref<4x256x64xf32, #tpu.memory_space<vmem>>, vector<1x256x64xf32>
    %12 = vector.shape_cast %11 : vector<1x256x64xf32> to vector<256x64xf32>
    %13 = vector.shape_cast %6 : vector<256x64xf32> to vector<1x256x64xf32>
    %14 = vector.broadcast %13 : vector<1x256x64xf32> to vector<2x256x64xf32>
    %15 = vector.broadcast %4 : vector<2x1x1xf32> to vector<2x256x64xf32>
    %16 = arith.mulf %14, %15 : vector<2x256x64xf32>
    %17 = vector.broadcast %3 : vector<2x1x1xf32> to vector<2x256x64xf32>
    %18 = arith.addf %17, %16 : vector<2x256x64xf32>
    %cst = arith.constant 0.000000e+00 : f32
    %cst_11 = arith.constant 1.500000e+01 : f32
    %19 = vector.broadcast %cst : f32 to vector<2x256x64xf32>
    %20 = arith.maximumf %19, %18 : vector<2x256x64xf32>
    %21 = vector.broadcast %cst_11 : f32 to vector<2x256x64xf32>
    %22 = arith.minimumf %21, %20 : vector<2x256x64xf32>
    %23 = vector.shape_cast %8 : vector<256x64xf32> to vector<1x256x64xf32>
    %24 = vector.broadcast %23 : vector<1x256x64xf32> to vector<2x256x64xf32>
    %25 = arith.subf %22, %24 : vector<2x256x64xf32>
    %26 = math.absf %25 : vector<2x256x64xf32>
    %cst_12 = arith.constant 1.000000e+00 : f32
    %27 = vector.broadcast %cst_12 : f32 to vector<2x256x64xf32>
    %28 = arith.subf %27, %26 : vector<2x256x64xf32>
    %cst_13 = arith.constant 0.000000e+00 : f32
    %29 = vector.broadcast %cst_13 : f32 to vector<2x256x64xf32>
    %30 = arith.maximumf %29, %28 : vector<2x256x64xf32>
    %31 = vector.shape_cast %10 : vector<256x64xf32> to vector<1x256x64xf32>
    %32 = vector.broadcast %31 : vector<1x256x64xf32> to vector<2x256x64xf32>
    %33 = vector.broadcast %2 : vector<2x1x1xf32> to vector<2x256x64xf32>
    %34 = arith.mulf %32, %33 : vector<2x256x64xf32>
    %35 = vector.broadcast %1 : vector<2x1x1xf32> to vector<2x256x64xf32>
    %36 = arith.addf %35, %34 : vector<2x256x64xf32>
    %cst_14 = arith.constant 0.000000e+00 : f32
    %cst_15 = arith.constant 1.500000e+01 : f32
    %37 = vector.broadcast %cst_14 : f32 to vector<2x256x64xf32>
    %38 = arith.maximumf %37, %36 : vector<2x256x64xf32>
    %39 = vector.broadcast %cst_15 : f32 to vector<2x256x64xf32>
    %40 = arith.minimumf %39, %38 : vector<2x256x64xf32>
    %41 = vector.shape_cast %12 : vector<256x64xf32> to vector<1x256x64xf32>
    %42 = vector.broadcast %41 : vector<1x256x64xf32> to vector<2x256x64xf32>
    %43 = arith.subf %40, %42 : vector<2x256x64xf32>
    %44 = math.absf %43 : vector<2x256x64xf32>
    %cst_16 = arith.constant 1.000000e+00 : f32
    %45 = vector.broadcast %cst_16 : f32 to vector<2x256x64xf32>
    %46 = arith.subf %45, %44 : vector<2x256x64xf32>
    %cst_17 = arith.constant 0.000000e+00 : f32
    %47 = vector.broadcast %cst_17 : f32 to vector<2x256x64xf32>
    %48 = arith.maximumf %47, %46 : vector<2x256x64xf32>
    %49 = arith.mulf %30, %48 : vector<2x256x64xf32>
    %c0_18 = arith.constant 0 : index
    %c0_19 = arith.constant 0 : index
    %c0_20 = arith.constant 0 : index
    %50 = vector.load %arg3[%c0_18, %c0_19, %c0_20] : memref<2x4x256xf32, #tpu.memory_space<vmem>>, vector<2x4x256xf32>
    %cst_21 = arith.constant dense<0.000000e+00> : vector<2x4x64xf32>
    %51 = tpu.matmul %50, %49, %cst_21 {dimension_numbers = #tpu.dot_dimension_numbers<[2], [1], [1], [2], [0, 0, 0, 1, 1, 2], [0], [0]>} : vector<2x4x256xf32>, vector<2x256x64xf32>, vector<2x4x64xf32> -> vector<2x4x64xf32>
    %c0_22 = arith.constant 0 : index
    %c0_23 = arith.constant 0 : index
    %c0_24 = arith.constant 0 : index
    %52 = vector.load %arg4[%c0_22, %c0_23, %c0_24] : memref<2x4x64xf32, #tpu.memory_space<vmem>>, vector<2x4x64xf32>
    tpu.vector_store %arg4[%c0_22, %c0_23, %c0_24], %51 {strides = array<i32>} : memref<2x4x64xf32, #tpu.memory_space<vmem>>, vector<2x4x64xf32>,
    return
  }
  func.func @transform_0(%arg0: i32) -> (i32, i32, i32) {
    %c0_i32 = arith.constant 0 : i32
    %c0_i32_0 = arith.constant 0 : i32
    %c0_i32_1 = arith.constant 0 : i32
    %c0_i32_2 = arith.constant 0 : i32
    return %c0_i32, %c0_i32_0, %c0_i32_1 : i32, i32, i32
  }
  func.func @transform_1(%arg0: i32) -> (i32, i32, i32) {
    %c0_i32 = arith.constant 0 : i32
    %c0_i32_0 = arith.constant 0 : i32
    %c0_i32_1 = arith.constant 0 : i32
    return %arg0, %c0_i32, %c0_i32_0 : i32, i32, i32
  }
  func.func @transform_2(%arg0: i32) -> (i32, i32, i32) {
    %c0_i32 = arith.constant 0 : i32
    %c0_i32_0 = arith.constant 0 : i32
    %c0_i32_1 = arith.constant 0 : i32
    return %arg0, %c0_i32, %c0_i32_0 : i32, i32, i32
  }
  func.func @transform_3(%arg0: i32) -> (i32, i32, i32) {
    %c0_i32 = arith.constant 0 : i32
    %c0_i32_0 = arith.constant 0 : i32
    %c0_i32_1 = arith.constant 0 : i32
    return %arg0, %c0_i32, %c0_i32_0 : i32, i32, i32
  }
}

</mosaic_0001>

<bundles_post_ra>
// kernel: tpu_custom_call.1
= control target key start
LH: loop header
LB: loop body
LE: loop exit
PB: predicated region body
PF: predicated region fallthrough
CT: control target
= control target key end

     0   :  { %8 = vsyncpa [#allocation3], 0  ;;  %s2883_s0 = inlined_call_operand.vmem [shape: f32[4,256,64], index: 0, kind: input, shape index: {}]   ;;  %s2884_s1 = inlined_call_operand.vmem [shape: f32[4,1,4], index: 1, kind: input, shape index: {}]   ;;  %s2885_s2 = inlined_call_operand.vmem [shape: f32[4,4,256], index: 2, kind: input, shape index: {}]   ;;  %s2886_s3 = inlined_call_operand.hbm [shape: f32[4,4,64], index: 3, kind: output, shape index: {}]  }
   0x1   :  { %10 = vsyncpa [#allocation3 + $0x1], 0  ;;  %s2019_s12 = smov 0   ;;  %s2021_s13 = smov 0  }
   0x2   :  { %s2023_s14 = smov 0   ;;  %s2025_s15 = smov 0  }
   0x3 LB: > { %s2040_s16 = sadd.s32 4294967295, %s1990_s15   ;;  %s1693_s17 = sadd.s32 4294967294, %s1990_s15   ;;  %s1990_s15 = sphi %s2025_s15, %s2902_s15   ;;  %s1986_s14 = sphi %s2023_s14, %s2901_s14   ;;  %s1982_s13 = sphi %s2021_s13, %s2900_s13   ;;  %s1978_s12 = sphi %s2019_s12, %s2899_s12  }
   0x4   : > { %s2044_s18 = sadd.s32 1, %s1990_s15   ;;  %s96_s19 = sadd.s32 1, %s1986_s14 }
   0x5   : > { %s93_s20 = ssub.s32 %s1990_s15, %s2044_s18  ;;  %p106_p0 = scmp.ne.s32.totalorder %s1986_s14, %s1982_s13 }
   0x6   : > { %p94_p1 = scmp.eq.s32.totalorder %s93_s20, 0  ;;  %p107_p2 = scmp.eq.s32.totalorder %s2040_s16, 1 }
   0x7   : > { %p112_p3 = scmp.ne.s32.totalorder %s1982_s13, %s1978_s12  ;;  %p113_p4 = scmp.eq.s32.totalorder %s1693_s17, 1 }
   0x8   : > { %s2055_s21 = scalar_select %p94_p1, %s1986_s14, %s96_s19  }
   0x9   : > { %p2057_p5 = por %p107_p2, %p106_p0  ;;  %p2061_p6 = por %p113_p4, %p112_p3 }
   0xa   : > { %p1696_p7 = scmp.ge.s32.totalorder %s1990_s15, 1  ;;  %p152_p8 = scmp.lt.s32.totalorder %s1990_s15, 3 }
   0xc   : > { %p153_p9 = pnand %p1696_p7, %p152_p8 }
   0xe   : > { %156 = sbr.rel (%p153_p9) target bundleno = 643 (0x283), region = 32 }
  0x13   : > { %s1698_s24 = sshll.u32 %s2040_s16, 1  ;;  %v1992_v0 = vmov 1   ;;  %v1993_v1 = vmov 3   ;;  %v1994_v4 = vmov 2   ;;  %v1995_v5 = vmov 0   ;;  %v227_v6 = vld [vmem:[%s2883_s0 + $0xf8] sm:$0xff] }
  0x14   : > { %1923 = vset.pattern.permute.xlu1 %v1992_v0  ;;  %1922 = vset.pattern.permute.xlu0 %v1993_v1  ;;  %p182_p10 = scmp.lt.s32.totalorder %s1698_s24, 3  ;;  %v1765_v7 = vld [vmem:[%s2883_s0 + $0x2f8] sm:$0xff]  ;;  %v226_v10 = vld [vmem:[%s2883_s0 + $0xf0] sm:$0xff]  ;;  %v225_v14 = vld [vmem:[%s2883_s0 + $0xe8] sm:$0xff]  ;;  %s178_s5 = sand.u32 1, %s1982_s13   ;;  %vm1605_vm0 = vcmask 519168  }
  0x15   : > { %v211_v8 = vld [vmem:[%s2883_s0 + $0x78] sm:$0xff]  ;;  %v1764_v11 = vld [vmem:[%s2883_s0 + $0x2f0] sm:$0xff]  ;;  %v1763_v15 = vld [vmem:[%s2883_s0 + $0x2e8] sm:$0xff]  ;;  %s1697_s6 = sshll.u32 %s178_s5, 3  ;;  %s1806_s9 = sshll.u32 %s2040_s16, 7 }
  0x16   : > { %s2904_s24 = smov (!%p182_p10, %s1698_s24), 3  ;;  %v1749_v9 = vld [vmem:[%s2883_s0 + $0x278] sm:$0xff]  ;;  %v210_v12 = vld [vmem:[%s2883_s0 + $0x70] sm:$0xff]  ;;  %v209_v18 = vld [vmem:[%s2883_s0 + $0x68] sm:$0xff]  ;;  %s2843_s17 = scalar_lea.sflag [#allocation3], %s178_s5 }
  0x17   : > { %s184_s27 = scalar_lea.vmem %s2884_s1, %s2904_s24  ;;  %v1748_v13 = vld [vmem:[%s2883_s0 + $0x270] sm:$0xff]  ;;  %v1747_v19 = vld [vmem:[%s2883_s0 + $0x268] sm:$0xff]  ;;  %v224_v20 = vld [vmem:[%s2883_s0 + $0xe0] sm:$0xff]  ;;  %s1805_s7 = sshll.u32 %s2904_s24, 3 }
  0x18   : > { %v1798_v2 = vld [vmem:[%s184_s27] ss:$0 sm:$0xff]  ;;  %v1799_v3 = vld [vmem:[%s184_s27 + $0x1] ss:$0 sm:$0xff]  ;;  %v223_v50 = vld [vmem:[%s2883_s0 + $0xd8] sm:$0xff]  ;;  %s2803_s19 = scalar_lea.vmem %s2885_s2, %s1805_s7  ;;  %s180_s7 = scalar_lea.vmem [#allocation2], %s1697_s6 }
  0x19   : > { %866 = vperm.xlu1 %1923, %v1798_v2   ;;  %338 = vperm.xlu0 %1922, %v1798_v2   ;;  %v1762_v25 = vld [vmem:[%s2883_s0 + $0x2e0] sm:$0xff]  ;;  %v1761_v51 = vld [vmem:[%s2883_s0 + $0x2d8] sm:$0xff]  ;;  %s1622_s8 = sshll.u32 %s180_s7, 4  ;;  %s2841_s24 = scalar_lea.hbm %s2886_s3, %s1806_s9  ;;  %s2836_s8 = int_to_ptr.vmem [resolvable:$true] %s1622_s8 }
  0x1a   : > { %v208_v26 = vld [vmem:[%s2883_s0 + $0x60] sm:$0xff]  ;;  %s1996_s16 = smov [#allocation2]  }
  0x1b   : > { %v1746_v27 = vld [vmem:[%s2883_s0 + $0x260] sm:$0xff]  ;;  %s1934_s20 = sshll.u32 %s1996_s16, 4  ;;  %s1935_s20 = int_to_ptr.vmem [resolvable:$false] %s1934_s20 }
  0x1c   : > { %s1936_s25 = scalar_lea.vmem %s1935_s20, 256  ;;  %p1937_p0 = scmp.lt.s32.totalorder %s2836_s8, %s1935_s20 }
  0x1d   : > { %870 = vperm.xlu1 %1923, %v1799_v3   ;;  %342 = vperm.xlu0 %1922, %v1799_v3  }
  0x21   : > { %1925 = vset.pattern.permute.xlu1 %v1994_v4  ;;  %1924 = vset.pattern.permute.xlu0 %v1994_v4 }
  0x22   : > { %414 = vperm.xlu1 %1925, %v1799_v3   ;;  %410 = vperm.xlu0 %1924, %v1798_v2  }
  0x26   : > { %1926 = vset.pattern.permute.xlu1 %v1995_v5  ;;  %1927 = vset.pattern.permute.xlu0 %v1995_v5 }
  0x27   : > { %938 = vperm.xlu1 %1926, %v1798_v2   ;;  %942 = vperm.xlu0 %1927, %v1799_v3  }
  0x94   : > { %v2104_v16 = vpop.permute.xlu1 %866  ;;  %v2106_v17 = vpop.permute.xlu0 %338 }
  0x95   : > { %v376_v21 = vmul.f32 %v2106_v17, %v227_v6  ;;  %v2119_v22 = vmul.f32 %v1765_v7, %v2104_v16  ;;  %v360_v23 = vmul.f32 %v2106_v17, %v211_v8  ;;  %v2123_v24 = vmul.f32 %v1749_v9, %v2104_v16 }
  0x96   : > { %v375_v28 = vmul.f32 %v2106_v17, %v226_v10  ;;  %v2136_v29 = vmul.f32 %v1764_v11, %v2104_v16  ;;  %v359_v30 = vmul.f32 %v2106_v17, %v210_v12  ;;  %v2140_v31 = vmul.f32 %v1748_v13, %v2104_v16 }
  0x97   : > { %v2143_v32 = vmul.f32 %v2106_v17, %v225_v14  ;;  %v2146_v33 = vmul.f32 %v1763_v15, %v2104_v16  ;;  %v2149_v34 = vmul.f32 %v2106_v17, %v209_v18  ;;  %v2152_v35 = vmul.f32 %v1747_v19, %v2104_v16 }
  0x98   : > { %v2154_v36 = vpop.permute.xlu1 %870  ;;  %v2156_v37 = vpop.permute.xlu0 %342  ;;  %v2159_v38 = vmul.f32 %v2106_v17, %v224_v20  ;;  %v2162_v39 = vmul.f32 %v1762_v25, %v2104_v16  ;;  %v2165_v40 = vmul.f32 %v2106_v17, %v208_v26  ;;  %v2168_v41 = vmul.f32 %v1746_v27, %v2104_v16 }
  0x99   : > { %2893 = vst [vmem:[#allocation5_spill] sm:$0xff] %v2154_v36  ;;  %2894 = vst [vmem:[#allocation6_spill] sm:$0xff] %v2156_v37  ;;  %v408_v42 = vmul.f32 %v2156_v37, %v227_v6  ;;  %v936_v43 = vmul.f32 %v1765_v7, %v2154_v36  ;;  %v392_v44 = vmul.f32 %v2156_v37, %v211_v8 }
  0x9a   : > { %v920_v45 = vmul.f32 %v1749_v9, %v2154_v36  ;;  %v407_v46 = vmul.f32 %v2156_v37, %v226_v10  ;;  %v2176_v47 = vmul.f32 %v1764_v11, %v2154_v36  ;;  %v391_v48 = vmul.f32 %v2156_v37, %v210_v12 }
  0x9b   : > { %v2180_v49 = vmul.f32 %v1748_v13, %v2154_v36  ;;  %v2189_v52 = vmul.f32 %v2156_v37, %v225_v14  ;;  %v2192_v53 = vmul.f32 %v1763_v15, %v2154_v36  ;;  %v2195_v54 = vmul.f32 %v2156_v37, %v209_v18  ;;  %v1733_v14 = vld [vmem:[%s2883_s0 + $0x1f8] sm:$0xff] }
  0x9c   : > { %v2198_v55 = vmul.f32 %v1747_v19, %v2154_v36  ;;  %v2201_v56 = vmul.f32 %v2156_v37, %v224_v20  ;;  %v2204_v57 = vmul.f32 %v1762_v25, %v2154_v36  ;;  %v2207_v58 = vmul.f32 %v2156_v37, %v208_v26  ;;  %v1717_v15 = vld [vmem:[%s2883_s0 + $0x178] sm:$0xff] }
  0x9d   : > { %v2210_v59 = vmul.f32 %v1746_v27, %v2154_v36  ;;  %v2212_v60 = vpop.permute.xlu1 %414  ;;  %v2214_v61 = vpop.permute.xlu0 %410  ;;  %v2217_v62 = vmul.f32 %v2106_v17, %v223_v50  ;;  %v2220_v63 = vmul.f32 %v1761_v51, %v2104_v16  ;;  %v2223_v0 = vmul.f32 %v2156_v37, %v223_v50 }
  0x9e   : > { %v2226_v1 = vmul.f32 %v1761_v51, %v2154_v36  ;;  %v448_v2 = vadd.f32 %v2214_v61, %v376_v21  ;;  %v480_v3 = vadd.f32 %v2212_v60, %v408_v42  ;;  %v432_v4 = vadd.f32 %v2214_v61, %v360_v23 }
  0x9f   : > { %v464_v5 = vadd.f32 %v2212_v60, %v392_v44  ;;  %v447_v6 = vadd.f32 %v2214_v61, %v375_v28  ;;  %v2234_v7 = vadd.f32 %v2212_v60, %v407_v46  ;;  %v2237_v8 = vadd.f32 %v2214_v61, %v359_v30 }
  0xa0   : > { %v2240_v9 = vadd.f32 %v2212_v60, %v391_v48  ;;  %v512_v10 = vmax.f32 %v448_v2, 0.0  ;;  %v544_v11 = vmax.f32 %v480_v3, 0.0  ;;  %v496_v12 = vmax.f32 %v432_v4, 0.0  ;;  %v1797_v4 = vld [vmem:[%s2883_s0 + $0x3f8] sm:$0xff] }
  0xa1   : > { %v528_v13 = vmax.f32 %v464_v5, 0.0  ;;  %v511_v18 = vmax.f32 %v447_v6, 0.0  ;;  %v543_v19 = vmax.f32 %v2234_v7, 0.0 }
  0xa2   : > { %v2251_v23 = vpop.permute.xlu1 %938  ;;  %v2253_v25 = vpop.permute.xlu0 %942  ;;  %v576_v26 = vmin.f32 %v512_v10, 15.0  ;;  %v608_v27 = vmin.f32 %v544_v11, 15.0  ;;  %v560_v28 = vmin.f32 %v496_v12, 15.0 }
  0xa3   : > { %v592_v30 = vmin.f32 %v528_v13, 15.0  ;;  %v976_v42 = vadd.f32 %v2251_v23, %v2119_v22  ;;  %v1008_v44 = vadd.f32 %v2253_v25, %v936_v43  ;;  %v960_v46 = vadd.f32 %v2251_v23, %v2123_v24  ;;  %v1781_v22 = vld [vmem:[%s2883_s0 + $0x378] sm:$0xff] }
  0xa4   : > { %v992_v48 = vadd.f32 %v2253_v25, %v920_v45  ;;  %v640_v50 = vsub.f32 %v576_v26, %v1733_v14  ;;  %v672_v51 = vsub.f32 %v608_v27, %v1733_v14  ;;  %v624_v2 = vsub.f32 %v560_v28, %v1717_v15 }
  0xa5   : > { %v656_v3 = vsub.f32 %v592_v30, %v1717_v15  ;;  %v1040_v5 = vmax.f32 %v976_v42, 0.0  ;;  %v1072_v6 = vmax.f32 %v1008_v44, 0.0  ;;  %v1024_v43 = vmax.f32 %v960_v46, 0.0 }
  0xa6   : > { %v1056_v7 = vmax.f32 %v992_v48, 0.0  ;;  %v704_v10 = vand.u32 2147483647, %v640_v50  ;;  %v736_v24 = vand.u32 2147483647, %v672_v51  ;;  %v975_v45 = vadd.f32 %v2251_v23, %v2136_v29  ;;  %v1732_v29 = vld [vmem:[%s2883_s0 + $0x1f0] sm:$0xff] }
  0xa7   : > { %v688_v11 = vand.u32 2147483647, %v624_v2  ;;  %v1104_v12 = vmin.f32 %v1040_v5, 15.0  ;;  %v1136_v13 = vmin.f32 %v1072_v6, 15.0  ;;  %v1088_v14 = vmin.f32 %v1024_v43, 15.0 }
  0xa8   : > { %v720_v15 = vand.u32 2147483647, %v656_v3  ;;  %v768_v26 = vsub.f32 1.0, %v704_v10  ;;  %v800_v27 = vsub.f32 1.0, %v736_v24  ;;  %v1120_v30 = vmin.f32 %v1056_v7, 15.0 }
  0xa9   : > { %v752_v28 = vsub.f32 1.0, %v688_v11  ;;  %v1168_v42 = vsub.f32 %v1104_v12, %v1797_v4  ;;  %v1200_v44 = vsub.f32 %v1136_v13, %v1797_v4  ;;  %v1152_v21 = vsub.f32 %v1088_v14, %v1781_v22 }
  0xaa   : > { %v784_v20 = vsub.f32 1.0, %v720_v15  ;;  %v832_v46 = vmax.f32 %v768_v26, 0.0  ;;  %v864_v48 = vmax.f32 %v800_v27, 0.0  ;;  %v1184_v51 = vsub.f32 %v1120_v30, %v1781_v22  ;;  %v1796_v22 = vld [vmem:[%s2883_s0 + $0x3f0] sm:$0xff] }
  0xab   : > { %v816_v50 = vmax.f32 %v752_v28, 0.0  ;;  %v1232_v2 = vand.u32 2147483647, %v1168_v42  ;;  %v1264_v5 = vand.u32 2147483647, %v1200_v44  ;;  %v1007_v3 = vadd.f32 %v2253_v25, %v2176_v47 }
  0xac   : > { %v1216_v6 = vand.u32 2147483647, %v1152_v21  ;;  %v848_v43 = vmax.f32 %v784_v20, 0.0  ;;  %v1248_v7 = vand.u32 2147483647, %v1184_v51  ;;  %v575_v10 = vmin.f32 %v511_v18, 15.0 }
  0xad   : > { %v1039_v4 = vmax.f32 %v975_v45, 0.0  ;;  %v1296_v24 = vsub.f32 1.0, %v1232_v2  ;;  %v1328_v11 = vsub.f32 1.0, %v1264_v5  ;;  %v607_v13 = vmin.f32 %v543_v19, 15.0 }
  0xae   : > { %v1280_v12 = vsub.f32 1.0, %v1216_v6  ;;  %v1312_v14 = vsub.f32 1.0, %v1248_v7  ;;  %v639_v15 = vsub.f32 %v575_v10, %v1732_v29  ;;  %v1071_v27 = vmax.f32 %v1007_v3, 0.0  ;;  %v1716_v3 = vld [vmem:[%s2883_s0 + $0x170] sm:$0xff] }
  0xaf   : > { %v1103_v26 = vmin.f32 %v1039_v4, 15.0  ;;  %v1360_v21 = vmax.f32 %v1296_v24, 0.0  ;;  %v1392_v28 = vmax.f32 %v1328_v11, 0.0  ;;  %v671_v47 = vsub.f32 %v607_v13, %v1732_v29 }
  0xb0   : > { %v1344_v30 = vmax.f32 %v1280_v12, 0.0  ;;  %v1376_v20 = vmax.f32 %v1312_v14, 0.0  ;;  %v703_v42 = vand.u32 2147483647, %v639_v15  ;;  %v1135_v45 = vmin.f32 %v1071_v27, 15.0 }
  0xb1   : > { %v1167_v18 = vsub.f32 %v1103_v26, %v1796_v22  ;;  %v1424_v44 = vmul.f32 %v1360_v21, %v832_v46  ;;  %v1456_v51 = vmul.f32 %v1392_v28, %v864_v48  ;;  %v735_v5 = vand.u32 2147483647, %v671_v47 }
  0xb2   : > { %v1408_v2 = vmul.f32 %v1344_v30, %v816_v50  ;;  %v1440_v6 = vmul.f32 %v1376_v20, %v848_v43  ;;  %v767_v36 = vsub.f32 1.0, %v703_v42  ;;  %v1199_v19 = vsub.f32 %v1135_v45, %v1796_v22  ;;  %v1731_v45 = vld [vmem:[%s2883_s0 + $0x1e8] sm:$0xff] }
  0xb3   : > { %v1231_v37 = vand.u32 2147483647, %v1167_v18  ;;  %1807 = vmatprep.subr.mxu0 %v1424_v44  ;;  %1842 = vmatprep.subr.mxu1 %v1456_v51  ;;  %v799_v7 = vsub.f32 1.0, %v735_v5  ;;  %v2895_v29 = vmax.f32 %v2237_v8, 0.0  ;;  %v959_v46 = vadd.f32 %v2251_v23, %v2140_v31  ;;  %v1780_v31 = vld [vmem:[%s2883_s0 + $0x370] sm:$0xff] }
  0xb4   : > { %v2896_v48 = vmax.f32 %v2240_v9, 0.0  ;;  %1808 = vmatpush3.msra.mxu0 %v1408_v2  ;;  %1843 = vmatpush3.msra.mxu1 %v1440_v6  ;;  %v831_v43 = vmax.f32 %v767_v36, 0.0  ;;  %v1263_v24 = vand.u32 2147483647, %v1199_v19  ;;  %v991_v11 = vadd.f32 %v2253_v25, %v2180_v49  ;;  %v1795_v2 = vld [vmem:[%s2883_s0 + $0x3e8] sm:$0xff] }
  0xb5   : > { %v559_v10 = vmin.f32 %v2895_v29, 15.0  ;;  %v1295_v4 = vsub.f32 1.0, %v1231_v37  ;;  %v863_v12 = vmax.f32 %v799_v7, 0.0  ;;  %v1023_v13 = vmax.f32 %v959_v46, 0.0 }
  0xb6   : > { %v591_v50 = vmin.f32 %v2896_v48, 15.0  ;;  %v1327_v15 = vsub.f32 1.0, %v1263_v24  ;;  %v1055_v9 = vmax.f32 %v991_v11, 0.0  ;;  %v446_v26 = vadd.f32 %v2214_v61, %v2143_v32 }
  0xb7   : > { %v623_v22 = vsub.f32 %v559_v10, %v1716_v3  ;;  %v1359_v8 = vmax.f32 %v1295_v4, 0.0  ;;  %v1087_v37 = vmin.f32 %v1023_v13, 15.0  ;;  %v974_v49 = vadd.f32 %v2251_v23, %v2146_v33 }
  0xb8   : > { %v655_v14 = vsub.f32 %v591_v50, %v1716_v3  ;;  %v1391_v28 = vmax.f32 %v1327_v15, 0.0  ;;  %v1119_v30 = vmin.f32 %v1055_v9, 15.0  ;;  %v510_v47 = vmax.f32 %v446_v26, 0.0 }
  0xb9   : > { %v687_v36 = vand.u32 2147483647, %v623_v22  ;;  %v1423_v21 = vmul.f32 %v1359_v8, %v831_v43  ;;  %v1151_v42 = vsub.f32 %v1087_v37, %v1780_v31  ;;  %v1038_v44 = vmax.f32 %v974_v49, 0.0 }
  0xba   : > { %v719_v27 = vand.u32 2147483647, %v655_v14  ;;  %v1455_v32 = vmul.f32 %v1391_v28, %v863_v12  ;;  %v1183_v51 = vsub.f32 %v1119_v30, %v1780_v31  ;;  %v574_v33 = vmin.f32 %v510_v47, 15.0 }
  0xbb   : > { %v751_v20 = vsub.f32 1.0, %v687_v36  ;;  %1809 = vmatprep.subr.mxu0 %v1423_v21  ;;  %v478_v5 = vadd.f32 %v2212_v60, %v2189_v52  ;;  %v1215_v19 = vand.u32 2147483647, %v1151_v42  ;;  %v1102_v7 = vmin.f32 %v1038_v44, 15.0  ;;  %v1715_v36 = vld [vmem:[%s2883_s0 + $0x168] sm:$0xff] }
  0xbc   : > { %v783_v18 = vsub.f32 1.0, %v719_v27  ;;  %1844 = vmatprep.subr.mxu1 %v1455_v32  ;;  %v1247_v29 = vand.u32 2147483647, %v1183_v51  ;;  %v638_v10 = vsub.f32 %v574_v33, %v1731_v45  ;;  %v1006_v48 = vadd.f32 %v2253_v25, %v2192_v53 }
  0xbd   : > { %v815_v6 = vmax.f32 %v751_v20, 0.0  ;;  %v542_v46 = vmax.f32 %v478_v5, 0.0  ;;  %v1279_v50 = vsub.f32 1.0, %v1215_v19  ;;  %v1166_v43 = vsub.f32 %v1102_v7, %v1795_v2 }
  0xbe   : > { %v847_v3 = vmax.f32 %v783_v18, 0.0  ;;  %v430_v4 = vadd.f32 %v2214_v61, %v2149_v34  ;;  %v958_v24 = vadd.f32 %v2251_v23, %v2152_v35  ;;  %v1311_v52 = vsub.f32 1.0, %v1247_v29  ;;  %v1779_v34 = vld [vmem:[%s2883_s0 + $0x368] sm:$0xff] }
  0xbf   : > { %v702_v11 = vand.u32 2147483647, %v638_v10  ;;  %v606_v12 = vmin.f32 %v542_v46, 15.0  ;;  %v1070_v22 = vmax.f32 %v1006_v48, 0.0  ;;  %v1343_v13 = vmax.f32 %v1279_v50, 0.0  ;;  %v1730_v50 = vld [vmem:[%s2883_s0 + $0x1e0] sm:$0xff] }
  0xc0   : > { %v1230_v14 = vand.u32 2147483647, %v1166_v43  ;;  %v494_v8 = vmax.f32 %v430_v4, 0.0  ;;  %v1022_v15 = vmax.f32 %v958_v24, 0.0  ;;  %v1375_v31 = vmax.f32 %v1311_v52, 0.0 }
  0xc1   : > { %v766_v9 = vsub.f32 1.0, %v702_v11  ;;  %v670_v26 = vsub.f32 %v606_v12, %v1731_v45  ;;  %v1134_v53 = vmin.f32 %v1070_v22, 15.0  ;;  %v1407_v35 = vmul.f32 %v1343_v13, %v815_v6 }
  0xc2   : > { %v1294_v37 = vsub.f32 1.0, %v1230_v14  ;;  %v558_v27 = vmin.f32 %v494_v8, 15.0  ;;  %v1086_v49 = vmin.f32 %v1022_v15, 15.0  ;;  %v1439_v21 = vmul.f32 %v1375_v31, %v847_v3  ;;  %v1794_v8 = vld [vmem:[%s2883_s0 + $0x3e0] sm:$0xff] }
  0xc3   : > { %v830_v28 = vmax.f32 %v766_v9, 0.0  ;;  %v734_v30 = vand.u32 2147483647, %v670_v26  ;;  %v1198_v47 = vsub.f32 %v1134_v53, %v1795_v2  ;;  %1810 = vmatpush3.msra.mxu0 %v1407_v35  ;;  %v462_v45 = vadd.f32 %v2212_v60, %v2195_v54 }
  0xc4   : > { %v1358_v20 = vmax.f32 %v1294_v37, 0.0  ;;  %v622_v42 = vsub.f32 %v558_v27, %v1715_v36  ;;  %v1150_v18 = vsub.f32 %v1086_v49, %v1779_v34  ;;  %1845 = vmatpush3.msra.mxu1 %v1439_v21  ;;  %v990_v51 = vadd.f32 %v2253_v25, %v2198_v55 }
  0xc5   : > { %v798_v44 = vsub.f32 1.0, %v734_v30  ;;  %v1262_v32 = vand.u32 2147483647, %v1198_v47  ;;  %v445_v33 = vadd.f32 %v2214_v61, %v2159_v38  ;;  %v526_v2 = vmax.f32 %v462_v45, 0.0  ;;  %v1714_v45 = vld [vmem:[%s2883_s0 + $0x160] sm:$0xff] }
  0xc6   : > { %v1422_v5 = vmul.f32 %v1358_v20, %v830_v28  ;;  %v686_v6 = vand.u32 2147483647, %v622_v42  ;;  %v1214_v19 = vand.u32 2147483647, %v1150_v18  ;;  %v1054_v29 = vmax.f32 %v990_v51, 0.0 }
  0xc7   : > { %v862_v3 = vmax.f32 %v798_v44, 0.0  ;;  %v1326_v7 = vsub.f32 1.0, %v1262_v32  ;;  %v509_v10 = vmax.f32 %v445_v33, 0.0  ;;  %v590_v48 = vmin.f32 %v526_v2, 15.0  ;;  %v1778_v33 = vld [vmem:[%s2883_s0 + $0x360] sm:$0xff] }
  0xc8   : > { %1811 = vmatprep.subr.mxu0 %v1422_v5  ;;  %v750_v46 = vsub.f32 1.0, %v686_v6  ;;  %v1278_v54 = vsub.f32 1.0, %v1214_v19  ;;  %v973_v55 = vadd.f32 %v2251_v23, %v2162_v39  ;;  %v1118_v43 = vmin.f32 %v1054_v29, 15.0 }
  0xc9   : > { %v1390_v38 = vmax.f32 %v1326_v7, 0.0  ;;  %v573_v4 = vmin.f32 %v509_v10, 15.0  ;;  %v477_v24 = vadd.f32 %v2212_v60, %v2201_v56  ;;  %v654_v12 = vsub.f32 %v590_v48, %v1715_v36 }
  0xca   : > { %v814_v52 = vmax.f32 %v750_v46, 0.0  ;;  %v1342_v11 = vmax.f32 %v1278_v54, 0.0  ;;  %v1037_v22 = vmax.f32 %v973_v55, 0.0  ;;  %v1182_v14 = vsub.f32 %v1118_v43, %v1779_v34 }
  0xcb   : > { %v1454_v13 = vmul.f32 %v1390_v38, %v862_v3  ;;  %v637_v15 = vsub.f32 %v573_v4, %v1730_v50  ;;  %v541_v31 = vmax.f32 %v477_v24, 0.0  ;;  %v718_v39 = vand.u32 2147483647, %v654_v12 }
  0xcc   : > { %v1406_v9 = vmul.f32 %v1342_v11, %v814_v52  ;;  %v1101_v26 = vmin.f32 %v1037_v22, 15.0  ;;  %v1005_v53 = vadd.f32 %v2253_v25, %v2204_v57  ;;  %v1246_v56 = vand.u32 2147483647, %v1182_v14 }
  0xcd   : > { %1846 = vmatprep.subr.mxu1 %v1454_v13  ;;  %v701_v35 = vand.u32 2147483647, %v637_v15  ;;  %v605_v37 = vmin.f32 %v541_v31, 15.0  ;;  %v429_v36 = vadd.f32 %v2214_v61, %v2165_v40  ;;  %v782_v34 = vsub.f32 1.0, %v718_v39  ;;  %v1729_v31 = vld [vmem:[%s2883_s0 + $0x1d8] sm:$0xff] }
  0xce   : > { %1812 = vmatpush3.msra.mxu0 %v1406_v9  ;;  %v1165_v27 = vsub.f32 %v1101_v26, %v1794_v8  ;;  %v1069_v49 = vmax.f32 %v1005_v53, 0.0  ;;  %v957_v21 = vadd.f32 %v2251_v23, %v2168_v41  ;;  %v1310_v28 = vsub.f32 1.0, %v1246_v56  ;;  %v207_v56 = vld [vmem:[%s2883_s0 + $0x58] sm:$0xff] }
  0xcf   : > { %v765_v30 = vsub.f32 1.0, %v701_v35  ;;  %v669_v47 = vsub.f32 %v605_v37, %v1730_v50  ;;  %v493_v20 = vmax.f32 %v429_v36, 0.0  ;;  %v846_v42 = vmax.f32 %v782_v34, 0.0  ;;  %v1793_v36 = vld [vmem:[%s2883_s0 + $0x3d8] sm:$0xff] }
  0xd0   : > { %v1229_v57 = vand.u32 2147483647, %v1165_v27  ;;  %v1133_v18 = vmin.f32 %v1069_v49, 15.0  ;;  %v1021_v44 = vmax.f32 %v957_v21, 0.0  ;;  %v1374_v40 = vmax.f32 %v1310_v28, 0.0  ;;  %v1745_v28 = vld [vmem:[%s2883_s0 + $0x258] sm:$0xff] }
  0xd1   : > { %v829_v32 = vmax.f32 %v765_v30, 0.0  ;;  %v733_v51 = vand.u32 2147483647, %v669_v47  ;;  %v557_v41 = vmin.f32 %v493_v20, 15.0  ;;  %v461_v2 = vadd.f32 %v2212_v60, %v2207_v58 }
  0xd2   : > { %v1293_v5 = vsub.f32 1.0, %v1229_v57  ;;  %v1197_v6 = vsub.f32 %v1133_v18, %v1794_v8  ;;  %v1085_v19 = vmin.f32 %v1021_v44, 15.0  ;;  %v1438_v3 = vmul.f32 %v1374_v40, %v846_v42 }
  0xd3   : > { %v797_v7 = vsub.f32 1.0, %v733_v51  ;;  %v621_v29 = vsub.f32 %v557_v41, %v1714_v45  ;;  %v989_v10 = vadd.f32 %v2253_v25, %v2210_v59  ;;  %v525_v50 = vmax.f32 %v461_v2, 0.0 }
  0xd4   : > { %v1357_v46 = vmax.f32 %v1293_v5, 0.0  ;;  %v1261_v54 = vand.u32 2147483647, %v1197_v6  ;;  %v1149_v48 = vsub.f32 %v1085_v19, %v1778_v33  ;;  %1847 = vmatpush3.msra.mxu1 %v1438_v3  ;;  %v444_v4 = vadd.f32 %v2214_v61, %v2217_v62 }
  0xd5   : > { %v861_v55 = vmax.f32 %v797_v7, 0.0  ;;  %v685_v38 = vand.u32 2147483647, %v621_v29  ;;  %v1053_v43 = vmax.f32 %v989_v10, 0.0  ;;  %v589_v11 = vmin.f32 %v525_v50, 15.0  ;;  %v2897_v7 = vld [vmem:[#allocation6_spill] sm:$0xff] }
  0xd6   : > { %v1421_v24 = vmul.f32 %v1357_v46, %v829_v32  ;;  %v1325_v52 = vsub.f32 1.0, %v1261_v54  ;;  %v1213_v58 = vand.u32 2147483647, %v1149_v48  ;;  %v508_v13 = vmax.f32 %v444_v4, 0.0  ;;  %v222_v10 = vld [vmem:[%s2883_s0 + $0xd0] sm:$0xff] }
  0xd7   : > { %v749_v12 = vsub.f32 1.0, %v685_v38  ;;  %v1117_v22 = vmin.f32 %v1053_v43, 15.0  ;;  %v972_v59 = vadd.f32 %v2251_v23, %v2220_v63  ;;  %v653_v15 = vsub.f32 %v589_v11, %v1714_v45  ;;  %v1777_v11 = vld [vmem:[%s2883_s0 + $0x358] sm:$0xff] }
  0xd8   : > { %1813 = vmatprep.subr.mxu0 %v1421_v24  ;;  %v1389_v14 = vmax.f32 %v1325_v52, 0.0  ;;  %v1277_v8 = vsub.f32 1.0, %v1213_v58  ;;  %v476_v62 = vadd.f32 %v2212_v60, %v2223_v0  ;;  %v572_v26 = vmin.f32 %v508_v13, 15.0  ;;  %v1760_v13 = vld [vmem:[%s2883_s0 + $0x2d0] sm:$0xff] }
  0xd9   : > { %v813_v9 = vmax.f32 %v749_v12, 0.0  ;;  %v1181_v39 = vsub.f32 %v1117_v22, %v1778_v33  ;;  %v1036_v53 = vmax.f32 %v972_v59, 0.0  ;;  %v717_v37 = vand.u32 2147483647, %v653_v15  ;;  %v2898_v12 = vld [vmem:[#allocation5_spill] sm:$0xff] }
  0xda   : > { %v1453_v63 = vmul.f32 %v1389_v14, %v861_v55  ;;  %v1341_v35 = vmax.f32 %v1277_v8, 0.0  ;;  %v540_v34 = vmax.f32 %v476_v62, 0.0  ;;  %v636_v49 = vsub.f32 %v572_v26, %v1729_v31  ;;  %v1713_v55 = vld [vmem:[%s2883_s0 + $0x158] sm:$0xff] }
  0xdb   : > { %v1245_v27 = vand.u32 2147483647, %v1181_v39  ;;  %v1100_v21 = vmin.f32 %v1036_v53, 15.0  ;;  %v1004_v0 = vadd.f32 %v2253_v25, %v2226_v1  ;;  %v781_v47 = vsub.f32 1.0, %v717_v37 }
  0xdc   : > { %1848 = vmatprep.subr.mxu1 %v1453_v63  ;;  %v1405_v30 = vmul.f32 %v1341_v35, %v813_v9  ;;  %v604_v20 = vmin.f32 %v540_v34, 15.0  ;;  %v356_v42 = vmul.f32 %v2106_v17, %v207_v56  ;;  %v700_v18 = vand.u32 2147483647, %v636_v49 }
  0xdd   : > { %v1309_v57 = vsub.f32 1.0, %v1245_v27  ;;  %v1164_v45 = vsub.f32 %v1100_v21, %v1793_v36  ;;  %v1068_v44 = vmax.f32 %v1004_v0, 0.0  ;;  %v845_v40 = vmax.f32 %v781_v47, 0.0 }
  0xde   : > { %1814 = vmatpush3.msra.mxu0 %v1405_v30  ;;  %v668_v32 = vsub.f32 %v604_v20, %v1729_v31  ;;  %v428_v51 = vadd.f32 %v2214_v61, %v356_v42  ;;  %v884_v1 = vmul.f32 %v1745_v28, %v2104_v16  ;;  %v764_v41 = vsub.f32 1.0, %v700_v18  ;;  %v206_v18 = vld [vmem:[%s2883_s0 + $0x50] sm:$0xff] }
  0xdf   : > { %v1373_v33 = vmax.f32 %v1309_v57, 0.0  ;;  %v1228_v5 = vand.u32 2147483647, %v1164_v45  ;;  %v1132_v6 = vmin.f32 %v1068_v44, 15.0  ;;  %v388_v29 = vmul.f32 %v2897_v7, %v207_v56 }
  0xe0   : > { %v732_v19 = vand.u32 2147483647, %v668_v32  ;;  %v492_v2 = vmax.f32 %v428_v51, 0.0  ;;  %v956_v3 = vadd.f32 %v2251_v23, %v884_v1  ;;  %v828_v54 = vmax.f32 %v764_v41, 0.0  ;;  %v1792_v1 = vld [vmem:[%s2883_s0 + $0x3d0] sm:$0xff] }
  0xe1   : > { %v1437_v46 = vmul.f32 %v1373_v33, %v845_v40  ;;  %v1292_v48 = vsub.f32 1.0, %v1228_v5  ;;  %v1196_v50 = vsub.f32 %v1132_v6, %v1793_v36  ;;  %v460_v24 = vadd.f32 %v2212_v60, %v388_v29 }
  0xe2   : > { %v796_v38 = vsub.f32 1.0, %v732_v19  ;;  %v556_v43 = vmin.f32 %v492_v2, 15.0  ;;  %v1020_v4 = vmax.f32 %v956_v3, 0.0  ;;  %v916_v22 = vmul.f32 %v1745_v28, %v2898_v12  ;;  %v1728_v28 = vld [vmem:[%s2883_s0 + $0x1d0] sm:$0xff] }
  0xe3   : > { %1849 = vmatpush3.msra.mxu1 %v1437_v46  ;;  %v1356_v52 = vmax.f32 %v1292_v48, 0.0  ;;  %v1260_v58 = vand.u32 2147483647, %v1196_v50  ;;  %v371_v59 = vmul.f32 %v2106_v17, %v222_v10  ;;  %v524_v31 = vmax.f32 %v460_v24, 0.0  ;;  %v1744_v48 = vld [vmem:[%s2883_s0 + $0x250] sm:$0xff] }
  0xe4   : > { %v860_v14 = vmax.f32 %v796_v38, 0.0  ;;  %v620_v8 = vsub.f32 %v556_v43, %v1713_v55  ;;  %v1084_v15 = vmin.f32 %v1020_v4, 15.0  ;;  %v988_v39 = vadd.f32 %v2253_v25, %v916_v22 }
  0xe5   : > { %v1420_v62 = vmul.f32 %v1356_v52, %v828_v54  ;;  %v1324_v9 = vsub.f32 1.0, %v1260_v58  ;;  %v443_v26 = vadd.f32 %v2214_v61, %v371_v59  ;;  %v588_v63 = vmin.f32 %v524_v31, 15.0 }
  0xe6   : > { %v684_v53 = vand.u32 2147483647, %v620_v8  ;;  %v1148_v56 = vsub.f32 %v1084_v15, %v1777_v11  ;;  %v899_v35 = vmul.f32 %v1760_v13, %v2104_v16  ;;  %v1052_v36 = vmax.f32 %v988_v39, 0.0 }
  0xe7   : > { %1815 = vmatprep.subr.mxu0 %v1420_v62  ;;  %v1388_v37 = vmax.f32 %v1324_v9, 0.0  ;;  %v507_v34 = vmax.f32 %v443_v26, 0.0  ;;  %v403_v27 = vmul.f32 %v2897_v7, %v222_v10  ;;  %v652_v0 = vsub.f32 %v588_v63, %v1713_v55  ;;  %v1712_v62 = vld [vmem:[%s2883_s0 + $0x150] sm:$0xff] }
  0xe8   : > { %v748_v49 = vsub.f32 1.0, %v684_v53  ;;  %v1212_v21 = vand.u32 2147483647, %v1148_v56  ;;  %v971_v30 = vadd.f32 %v2251_v23, %v899_v35  ;;  %v1116_v20 = vmin.f32 %v1052_v36, 15.0  ;;  %v221_v56 = vld [vmem:[%s2883_s0 + $0xc8] sm:$0xff] }
  0xe9   : > { %v1452_v47 = vmul.f32 %v1388_v37, %v860_v14  ;;  %v571_v42 = vmin.f32 %v507_v34, 15.0  ;;  %v475_v57 = vadd.f32 %v2212_v60, %v403_v27  ;;  %v716_v40 = vand.u32 2147483647, %v652_v0  ;;  %v1759_v0 = vld [vmem:[%s2883_s0 + $0x2c8] sm:$0xff] }
  0xea   : > { %v812_v45 = vmax.f32 %v748_v49, 0.0  ;;  %v1276_v44 = vsub.f32 1.0, %v1212_v21  ;;  %v1035_v32 = vmax.f32 %v971_v30, 0.0  ;;  %v1180_v51 = vsub.f32 %v1116_v20, %v1777_v11 }
  0xeb   : > { %1850 = vmatprep.subr.mxu1 %v1452_v47  ;;  %v635_v33 = vsub.f32 %v571_v42, %v1728_v28  ;;  %v539_v41 = vmax.f32 %v475_v57, 0.0  ;;  %v931_v5 = vmul.f32 %v1760_v13, %v2898_v12  ;;  %v780_v19 = vsub.f32 1.0, %v716_v40  ;;  %v1776_v47 = vld [vmem:[%s2883_s0 + $0x350] sm:$0xff] }
  0xec   : > { %v1340_v6 = vmax.f32 %v1276_v44, 0.0  ;;  %v1099_v2 = vmin.f32 %v1035_v32, 15.0  ;;  %v355_v3 = vmul.f32 %v2106_v17, %v206_v18  ;;  %v1244_v29 = vand.u32 2147483647, %v1180_v51 }
  0xed   : > { %v699_v10 = vand.u32 2147483647, %v635_v33  ;;  %v603_v46 = vmin.f32 %v539_v41, 15.0  ;;  %v1003_v54 = vadd.f32 %v2253_v25, %v931_v5  ;;  %v844_v55 = vmax.f32 %v780_v19, 0.0 }
  0xee   : > { %v1404_v50 = vmul.f32 %v1340_v6, %v812_v45  ;;  %v1163_v38 = vsub.f32 %v1099_v2, %v1792_v1  ;;  %v427_v43 = vadd.f32 %v2214_v61, %v355_v3  ;;  %v1308_v4 = vsub.f32 1.0, %v1244_v29 }
  0xef   : > { %v763_v24 = vsub.f32 1.0, %v699_v10  ;;  %v667_v52 = vsub.f32 %v603_v46, %v1728_v28  ;;  %v1067_v58 = vmax.f32 %v1003_v54, 0.0  ;;  %v883_v13 = vmul.f32 %v1744_v48, %v2104_v16  ;;  %v205_v10 = vld [vmem:[%s2883_s0 + $0x48] sm:$0xff] }
  0xf0   : > { %1816 = vmatpush3.msra.mxu0 %v1404_v50  ;;  %v1227_v11 = vand.u32 2147483647, %v1163_v38  ;;  %v491_v22 = vmax.f32 %v427_v43, 0.0  ;;  %v387_v59 = vmul.f32 %v2897_v7, %v206_v18  ;;  %v1372_v14 = vmax.f32 %v1308_v4, 0.0  ;;  %v1727_v50 = vld [vmem:[%s2883_s0 + $0x1c8] sm:$0xff] }
  0xf1   : > { %v827_v8 = vmax.f32 %v763_v24, 0.0  ;;  %v731_v15 = vand.u32 2147483647, %v667_v52  ;;  %v1131_v31 = vmin.f32 %v1067_v58, 15.0  ;;  %v955_v26 = vadd.f32 %v2251_v23, %v883_v13 }
  0xf2   : > { %v1291_v9 = vsub.f32 1.0, %v1227_v11  ;;  %v555_v39 = vmin.f32 %v491_v22, 15.0  ;;  %v459_v53 = vadd.f32 %v2212_v60, %v387_v59  ;;  %v1436_v63 = vmul.f32 %v1372_v14, %v844_v55  ;;  %v1791_v11 = vld [vmem:[%s2883_s0 + $0x3c8] sm:$0xff] }
  0xf3   : > { %v795_v35 = vsub.f32 1.0, %v731_v15  ;;  %v1195_v37 = vsub.f32 %v1131_v31, %v1792_v1  ;;  %v915_v36 = vmul.f32 %v1744_v48, %v2898_v12  ;;  %v1019_v49 = vmax.f32 %v955_v26, 0.0  ;;  %v1743_v15 = vld [vmem:[%s2883_s0 + $0x248] sm:$0xff] }
  0xf4   : > { %v1355_v34 = vmax.f32 %v1291_v9, 0.0  ;;  %v619_v27 = vsub.f32 %v555_v39, %v1712_v62  ;;  %v523_v21 = vmax.f32 %v459_v53, 0.0  ;;  %1851 = vmatpush3.msra.mxu1 %v1436_v63  ;;  %v370_v42 = vmul.f32 %v2106_v17, %v221_v56 }
  0xf5   : > { %v859_v28 = vmax.f32 %v795_v35, 0.0  ;;  %v1259_v30 = vand.u32 2147483647, %v1195_v37  ;;  %v987_v20 = vadd.f32 %v2253_v25, %v915_v36  ;;  %v1083_v45 = vmin.f32 %v1019_v49, 15.0 }
  0xf6   : > { %v1419_v57 = vmul.f32 %v1355_v34, %v827_v8  ;;  %v683_v18 = vand.u32 2147483647, %v619_v27  ;;  %v587_v44 = vmin.f32 %v523_v21, 15.0  ;;  %v442_v51 = vadd.f32 %v2214_v61, %v370_v42 }
  0xf7   : > { %v1323_v40 = vsub.f32 1.0, %v1259_v30  ;;  %v1051_v32 = vmax.f32 %v987_v20, 0.0  ;;  %v898_v1 = vmul.f32 %v1759_v0, %v2104_v16  ;;  %v1147_v41 = vsub.f32 %v1083_v45, %v1776_v47  ;;  %v1711_v20 = vld [vmem:[%s2883_s0 + $0x148] sm:$0xff] }
  0xf8   : > { %1817 = vmatprep.subr.mxu0 %v1419_v57  ;;  %v747_v33 = vsub.f32 1.0, %v683_v18  ;;  %v651_v5 = vsub.f32 %v587_v44, %v1712_v62  ;;  %v402_v6 = vmul.f32 %v2897_v7, %v221_v56  ;;  %v506_v3 = vmax.f32 %v442_v51, 0.0  ;;  %v220_v18 = vld [vmem:[%s2883_s0 + $0xc0] sm:$0xff] }
  0xf9   : > { %v1387_v19 = vmax.f32 %v1323_v40, 0.0  ;;  %v1115_v2 = vmin.f32 %v1051_v32, 15.0  ;;  %v970_v29 = vadd.f32 %v2251_v23, %v898_v1  ;;  %v1211_v54 = vand.u32 2147483647, %v1147_v41 }
  0xfa   : > { %v811_v46 = vmax.f32 %v747_v33, 0.0  ;;  %v715_v48 = vand.u32 2147483647, %v651_v5  ;;  %v474_v55 = vadd.f32 %v2212_v60, %v402_v6  ;;  %v570_v4 = vmin.f32 %v506_v3, 15.0  ;;  %v1775_v6 = vld [vmem:[%s2883_s0 + $0x348] sm:$0xff]  ;;  %v1758_v3 = vld [vmem:[%s2883_s0 + $0x2c0] sm:$0xff] }
  0xfb   : > { %v1451_v38 = vmul.f32 %v1387_v19, %v859_v28  ;;  %v1179_v43 = vsub.f32 %v1115_v2, %v1776_v47  ;;  %v1034_v24 = vmax.f32 %v970_v29, 0.0  ;;  %v1275_v52 = vsub.f32 1.0, %v1211_v54 }
  0xfc   : > { %v779_v58 = vsub.f32 1.0, %v715_v48  ;;  %v538_v22 = vmax.f32 %v474_v55, 0.0  ;;  %v930_v13 = vmul.f32 %v1759_v0, %v2898_v12  ;;  %v634_v14 = vsub.f32 %v570_v4, %v1727_v50 }
  0xfd   : > { %1852 = vmatprep.subr.mxu1 %v1451_v38  ;;  %v1243_v59 = vand.u32 2147483647, %v1179_v43  ;;  %v1098_v8 = vmin.f32 %v1034_v24, 15.0  ;;  %v354_v31 = vmul.f32 %v2106_v17, %v205_v10  ;;  %v1339_v62 = vmax.f32 %v1275_v52, 0.0 }
  0xfe   : > { %v843_v9 = vmax.f32 %v779_v58, 0.0  ;;  %v602_v39 = vmin.f32 %v538_v22, 15.0  ;;  %v1002_v26 = vadd.f32 %v2253_v25, %v930_v13  ;;  %v698_v56 = vand.u32 2147483647, %v634_v14 }
  0xff   : > { %v1307_v53 = vsub.f32 1.0, %v1243_v59  ;;  %v1162_v63 = vsub.f32 %v1098_v8, %v1791_v11  ;;  %v426_v35 = vadd.f32 %v2214_v61, %v354_v31  ;;  %v1403_v37 = vmul.f32 %v1339_v62, %v811_v46  ;;  %v1726_v31 = vld [vmem:[%s2883_s0 + $0x1c0] sm:$0xff] }
 0x100   : > { %v666_v36 = vsub.f32 %v602_v39, %v1727_v50  ;;  %v1066_v34 = vmax.f32 %v1002_v26, 0.0  ;;  %v882_v27 = vmul.f32 %v1743_v15, %v2104_v16  ;;  %v762_v21 = vsub.f32 1.0, %v698_v56  ;;  %v204_v56 = vld [vmem:[%s2883_s0 + $0x40] sm:$0xff] }
 0x101   : > { %v1371_v49 = vmax.f32 %v1307_v53, 0.0  ;;  %v1226_v0 = vand.u32 2147483647, %v1162_v63  ;;  %v490_v28 = vmax.f32 %v426_v35, 0.0  ;;  %1818 = vmatpush3.msra.mxu0 %v1403_v37  ;;  %v386_v57 = vmul.f32 %v2897_v7, %v205_v10 }
 0x102   : > { %v730_v30 = vand.u32 2147483647, %v666_v36  ;;  %v1130_v47 = vmin.f32 %v1066_v34, 15.0  ;;  %v954_v42 = vadd.f32 %v2251_v23, %v882_v27  ;;  %v826_v44 = vmax.f32 %v762_v21, 0.0  ;;  %v1790_v27 = vld [vmem:[%s2883_s0 + $0x3c0] sm:$0xff] }
 0x103   : > { %v1435_v45 = vmul.f32 %v1371_v49, %v843_v9  ;;  %v1290_v40 = vsub.f32 1.0, %v1226_v0  ;;  %v554_v32 = vmin.f32 %v490_v28, 15.0  ;;  %v458_v41 = vadd.f32 %v2212_v60, %v386_v57 }
 0x104   : > { %v794_v51 = vsub.f32 1.0, %v730_v30  ;;  %v1194_v1 = vsub.f32 %v1130_v47, %v1791_v11  ;;  %v1018_v33 = vmax.f32 %v954_v42, 0.0  ;;  %v914_v2 = vmul.f32 %v1743_v15, %v2898_v12 }
 0x105   : > { %1853 = vmatpush3.msra.mxu1 %v1435_v45  ;;  %v1354_v5 = vmax.f32 %v1290_v40, 0.0  ;;  %v618_v19 = vsub.f32 %v554_v32, %v1711_v20  ;;  %v369_v29 = vmul.f32 %v2106_v17, %v220_v18  ;;  %v522_v48 = vmax.f32 %v458_v41, 0.0 }
 0x106   : > { %v858_v10 = vmax.f32 %v794_v51, 0.0  ;;  %v1258_v46 = vand.u32 2147483647, %v1194_v1  ;;  %v1082_v54 = vmin.f32 %v1018_v33, 15.0  ;;  %v986_v38 = vadd.f32 %v2253_v25, %v914_v2 }
 0x107   : > { %v1418_v50 = vmul.f32 %v1354_v5, %v826_v44  ;;  %v682_v55 = vand.u32 2147483647, %v618_v19  ;;  %v441_v43 = vadd.f32 %v2214_v61, %v369_v29  ;;  %v586_v52 = vmin.f32 %v522_v48, 15.0  ;;  %v1742_v44 = vld [vmem:[%s2883_s0 + $0x240] sm:$0xff] }
 0x108   : > { %v1322_v4 = vsub.f32 1.0, %v1258_v46  ;;  %v1146_v24 = vsub.f32 %v1082_v54, %v1775_v6  ;;  %v897_v58 = vmul.f32 %v1758_v3, %v2104_v16  ;;  %v1050_v22 = vmax.f32 %v986_v38, 0.0 }
 0x109   : > { %1819 = vmatprep.subr.mxu0 %v1418_v50  ;;  %v746_v11 = vsub.f32 1.0, %v682_v55  ;;  %v505_v13 = vmax.f32 %v441_v43, 0.0  ;;  %v401_v59 = vmul.f32 %v2897_v7, %v220_v18  ;;  %v650_v15 = vsub.f32 %v586_v52, %v1711_v20  ;;  %v1710_v50 = vld [vmem:[%s2883_s0 + $0x140] sm:$0xff] }
 0x10a   : > { %v1386_v14 = vmax.f32 %v1322_v4, 0.0  ;;  %v1210_v8 = vand.u32 2147483647, %v1146_v24  ;;  %v969_v62 = vadd.f32 %v2251_v23, %v897_v58  ;;  %v1114_v39 = vmin.f32 %v1050_v22, 15.0  ;;  %v219_v24 = vld [vmem:[%s2883_s0 + $0xb8] sm:$0xff] }
 0x10b   : > { %v810_v9 = vmax.f32 %v746_v11, 0.0  ;;  %v569_v26 = vmin.f32 %v505_v13, 15.0  ;;  %v473_v53 = vadd.f32 %v2212_v60, %v401_v59  ;;  %v714_v37 = vand.u32 2147483647, %v650_v15  ;;  %v1757_v15 = vld [vmem:[%s2883_s0 + $0x2b8] sm:$0xff] }
 0x10c   : > { %v1450_v63 = vmul.f32 %v1386_v14, %v858_v10  ;;  %v1274_v35 = vsub.f32 1.0, %v1210_v8  ;;  %v1033_v36 = vmax.f32 %v969_v62, 0.0  ;;  %v1178_v34 = vsub.f32 %v1114_v39, %v1775_v6 }
 0x10d   : > { %v633_v49 = vsub.f32 %v569_v26, %v1726_v31  ;;  %v537_v21 = vmax.f32 %v473_v53, 0.0  ;;  %v929_v0 = vmul.f32 %v1758_v3, %v2898_v12  ;;  %v778_v30 = vsub.f32 1.0, %v714_v37 }
 0x10e   : > { %1854 = vmatprep.subr.mxu1 %v1450_v63  ;;  %v1338_v28 = vmax.f32 %v1274_v35, 0.0  ;;  %v1097_v47 = vmin.f32 %v1033_v36, 15.0  ;;  %v353_v20 = vmul.f32 %v2106_v17, %v204_v56  ;;  %v1242_v42 = vand.u32 2147483647, %v1178_v34 }
 0x10f   : > { %v697_v57 = vand.u32 2147483647, %v633_v49  ;;  %v601_v18 = vmin.f32 %v537_v21, 15.0  ;;  %v1001_v45 = vadd.f32 %v2253_v25, %v929_v0  ;;  %v842_v32 = vmax.f32 %v778_v30, 0.0 }
 0x110   : > { %v1402_v40 = vmul.f32 %v1338_v28, %v810_v9  ;;  %v1161_v51 = vsub.f32 %v1097_v47, %v1790_v27  ;;  %v425_v1 = vadd.f32 %v2214_v61, %v353_v20  ;;  %v1306_v33 = vsub.f32 1.0, %v1242_v42  ;;  %v1774_v9 = vld [vmem:[%s2883_s0 + $0x340] sm:$0xff] }
 0x111   : > { %v761_v41 = vsub.f32 1.0, %v697_v57  ;;  %v665_v5 = vsub.f32 %v601_v18, %v1726_v31  ;;  %v1065_v6 = vmax.f32 %v1001_v45, 0.0  ;;  %v881_v3 = vmul.f32 %v1742_v44, %v2104_v16  ;;  %v203_v57 = vld [vmem:[%s2883_s0 + $0x38] sm:$0xff] }
 0x112   : > { %1820 = vmatpush3.msra.mxu0 %v1402_v40  ;;  %v1225_v19 = vand.u32 2147483647, %v1161_v51  ;;  %v489_v2 = vmax.f32 %v425_v1, 0.0  ;;  %v385_v29 = vmul.f32 %v2897_v7, %v204_v56  ;;  %v1370_v10 = vmax.f32 %v1306_v33, 0.0  ;;  %v1725_v40 = vld [vmem:[%s2883_s0 + $0x1b8] sm:$0xff] }
 0x113   : > { %v825_v46 = vmax.f32 %v761_v41, 0.0  ;;  %v729_v54 = vand.u32 2147483647, %v665_v5  ;;  %v1129_v48 = vmin.f32 %v1065_v6, 15.0  ;;  %v953_v43 = vadd.f32 %v2251_v23, %v881_v3 }
 0x114   : > { %v1289_v55 = vsub.f32 1.0, %v1225_v19  ;;  %v553_v38 = vmin.f32 %v489_v2, 15.0  ;;  %v457_v4 = vadd.f32 %v2212_v60, %v385_v29  ;;  %v1434_v52 = vmul.f32 %v1370_v10, %v842_v32  ;;  %v1789_v19 = vld [vmem:[%s2883_s0 + $0x3b8] sm:$0xff] }
 0x115   : > { %v793_v58 = vsub.f32 1.0, %v729_v54  ;;  %v1193_v11 = vsub.f32 %v1129_v48, %v1790_v27  ;;  %v913_v22 = vmul.f32 %v1742_v44, %v2898_v12  ;;  %v1017_v14 = vmax.f32 %v953_v43, 0.0  ;;  %v1741_v54 = vld [vmem:[%s2883_s0 + $0x238] sm:$0xff] }
 0x116   : > { %v1353_v13 = vmax.f32 %v1289_v55, 0.0  ;;  %v617_v59 = vsub.f32 %v553_v38, %v1710_v50  ;;  %v521_v8 = vmax.f32 %v457_v4, 0.0  ;;  %1855 = vmatpush3.msra.mxu1 %v1434_v52  ;;  %v368_v26 = vmul.f32 %v2106_v17, %v219_v24 }
 0x117   : > { %v857_v31 = vmax.f32 %v793_v58, 0.0  ;;  %v1257_v62 = vand.u32 2147483647, %v1193_v11  ;;  %v985_v39 = vadd.f32 %v2253_v25, %v913_v22  ;;  %v1081_v63 = vmin.f32 %v1017_v14, 15.0 }
 0x118   : > { %v1417_v53 = vmul.f32 %v1353_v13, %v825_v46  ;;  %v681_v56 = vand.u32 2147483647, %v617_v59  ;;  %v585_v35 = vmin.f32 %v521_v8, 15.0  ;;  %v440_v34 = vadd.f32 %v2214_v61, %v368_v26 }
 0x119   : > { %v1321_v37 = vsub.f32 1.0, %v1257_v62  ;;  %v1049_v36 = vmax.f32 %v985_v39, 0.0  ;;  %v896_v27 = vmul.f32 %v1757_v15, %v2104_v16  ;;  %v1145_v21 = vsub.f32 %v1081_v63, %v1774_v9  ;;  %v1709_v39 = vld [vmem:[%s2883_s0 + $0x138] sm:$0xff] }
 0x11a   : > { %1821 = vmatprep.subr.mxu0 %v1417_v53  ;;  %v745_v49 = vsub.f32 1.0, %v681_v56  ;;  %v649_v0 = vsub.f32 %v585_v35, %v1710_v50  ;;  %v400_v28 = vmul.f32 %v2897_v7, %v219_v24  ;;  %v504_v20 = vmax.f32 %v440_v34, 0.0  ;;  %v218_v56 = vld [vmem:[%s2883_s0 + $0xb0] sm:$0xff] }
 0x11b   : > { %v1385_v30 = vmax.f32 %v1321_v37, 0.0  ;;  %v1113_v47 = vmin.f32 %v1049_v36, 15.0  ;;  %v968_v42 = vadd.f32 %v2251_v23, %v896_v27  ;;  %v1209_v45 = vand.u32 2147483647, %v1145_v21 }
 0x11c   : > { %v809_v18 = vmax.f32 %v745_v49, 0.0  ;;  %v713_v44 = vand.u32 2147483647, %v649_v0  ;;  %v472_v32 = vadd.f32 %v2212_v60, %v400_v28  ;;  %v568_v33 = vmin.f32 %v504_v20, 15.0  ;;  %v1773_v28 = vld [vmem:[%s2883_s0 + $0x338] sm:$0xff]  ;;  %v1756_v20 = vld [vmem:[%s2883_s0 + $0x2b0] sm:$0xff] }
 0x11d   : > { %v1449_v51 = vmul.f32 %v1385_v30, %v857_v31  ;;  %v1177_v1 = vsub.f32 %v1113_v47, %v1774_v9  ;;  %v1032_v41 = vmax.f32 %v968_v42, 0.0  ;;  %v1273_v5 = vsub.f32 1.0, %v1209_v45 }
 0x11e   : > { %v777_v6 = vsub.f32 1.0, %v713_v44  ;;  %v536_v2 = vmax.f32 %v472_v32, 0.0  ;;  %v928_v3 = vmul.f32 %v1757_v15, %v2898_v12  ;;  %v632_v10 = vsub.f32 %v568_v33, %v1725_v40 }
 0x11f   : > { %1856 = vmatprep.subr.mxu1 %v1449_v51  ;;  %v1241_v29 = vand.u32 2147483647, %v1177_v1  ;;  %v1096_v46 = vmin.f32 %v1032_v41, 15.0  ;;  %v352_v48 = vmul.f32 %v2106_v17, %v203_v57  ;;  %v1337_v50 = vmax.f32 %v1273_v5, 0.0 }
 0x120   : > { %v841_v55 = vmax.f32 %v777_v6, 0.0  ;;  %v600_v38 = vmin.f32 %v536_v2, 15.0  ;;  %v1000_v43 = vadd.f32 %v2253_v25, %v928_v3  ;;  %v696_v24 = vand.u32 2147483647, %v632_v10 }
 0x121   : > { %v1305_v4 = vsub.f32 1.0, %v1241_v29  ;;  %v1160_v52 = vsub.f32 %v1096_v46, %v1789_v19  ;;  %v424_v58 = vadd.f32 %v2214_v61, %v352_v48  ;;  %v1401_v11 = vmul.f32 %v1337_v50, %v809_v18  ;;  %v1724_v48 = vld [vmem:[%s2883_s0 + $0x1b0] sm:$0xff] }
 0x122   : > { %v664_v22 = vsub.f32 %v600_v38, %v1725_v40  ;;  %v1064_v13 = vmax.f32 %v1000_v43, 0.0  ;;  %v880_v59 = vmul.f32 %v1741_v54, %v2104_v16  ;;  %v760_v8 = vsub.f32 1.0, %v696_v24  ;;  %v202_v24 = vld [vmem:[%s2883_s0 + $0x30] sm:$0xff] }
 0x123   : > { %v1369_v14 = vmax.f32 %v1305_v4, 0.0  ;;  %v1224_v15 = vand.u32 2147483647, %v1160_v52  ;;  %v488_v31 = vmax.f32 %v424_v58, 0.0  ;;  %1822 = vmatpush3.msra.mxu0 %v1401_v11  ;;  %v384_v53 = vmul.f32 %v2897_v7, %v203_v57 }
 0x124   : > { %v728_v62 = vand.u32 2147483647, %v664_v22  ;;  %v1128_v9 = vmin.f32 %v1064_v13, 15.0  ;;  %v952_v26 = vadd.f32 %v2251_v23, %v880_v59  ;;  %v824_v35 = vmax.f32 %v760_v8, 0.0  ;;  %v1788_v59 = vld [vmem:[%s2883_s0 + $0x3b0] sm:$0xff] }
 0x125   : > { %v1433_v63 = vmul.f32 %v1369_v14, %v841_v55  ;;  %v1288_v37 = vsub.f32 1.0, %v1224_v15  ;;  %v552_v36 = vmin.f32 %v488_v31, 15.0  ;;  %v456_v21 = vadd.f32 %v2212_v60, %v384_v53 }
 0x126   : > { %v792_v34 = vsub.f32 1.0, %v728_v62  ;;  %v1192_v27 = vsub.f32 %v1128_v9, %v1789_v19  ;;  %v1016_v49 = vmax.f32 %v952_v26, 0.0  ;;  %v912_v47 = vmul.f32 %v1741_v54, %v2898_v12 }
 0x127   : > { %1857 = vmatpush3.msra.mxu1 %v1433_v63  ;;  %v1352_v0 = vmax.f32 %v1288_v37, 0.0  ;;  %v616_v30 = vsub.f32 %v552_v36, %v1709_v39  ;;  %v367_v42 = vmul.f32 %v2106_v17, %v218_v56  ;;  %v520_v44 = vmax.f32 %v456_v21, 0.0 }
 0x128   : > { %v856_v57 = vmax.f32 %v792_v34, 0.0  ;;  %v1256_v18 = vand.u32 2147483647, %v1192_v27  ;;  %v1080_v45 = vmin.f32 %v1016_v49, 15.0  ;;  %v984_v51 = vadd.f32 %v2253_v25, %v912_v47 }
 0x129   : > { %v1416_v40 = vmul.f32 %v1352_v0, %v824_v35  ;;  %v680_v32 = vand.u32 2147483647, %v616_v30  ;;  %v439_v1 = vadd.f32 %v2214_v61, %v367_v42  ;;  %v584_v5 = vmin.f32 %v520_v44, 15.0  ;;  %v1740_v35 = vld [vmem:[%s2883_s0 + $0x230] sm:$0xff] }
 0x12a   : > { %v1320_v33 = vsub.f32 1.0, %v1256_v18  ;;  %v1144_v41 = vsub.f32 %v1080_v45, %v1773_v28  ;;  %v895_v6 = vmul.f32 %v1756_v20, %v2104_v16  ;;  %v1048_v2 = vmax.f32 %v984_v51, 0.0 }
 0x12b   : > { %1823 = vmatprep.subr.mxu0 %v1416_v40  ;;  %v744_v19 = vsub.f32 1.0, %v680_v32  ;;  %v503_v3 = vmax.f32 %v439_v1, 0.0  ;;  %v399_v29 = vmul.f32 %v2897_v7, %v218_v56  ;;  %v648_v54 = vsub.f32 %v584_v5, %v1709_v39  ;;  %v1708_v40 = vld [vmem:[%s2883_s0 + $0x130] sm:$0xff] }
 0x12c   : > { %v1384_v10 = vmax.f32 %v1320_v33, 0.0  ;;  %v1208_v46 = vand.u32 2147483647, %v1144_v41  ;;  %v967_v50 = vadd.f32 %v2251_v23, %v895_v6  ;;  %v1112_v38 = vmin.f32 %v1048_v2, 15.0  ;;  %v217_v41 = vld [vmem:[%s2883_s0 + $0xa8] sm:$0xff] }
 0x12d   : > { %v808_v55 = vmax.f32 %v744_v19, 0.0  ;;  %v567_v43 = vmin.f32 %v503_v3, 15.0  ;;  %v471_v4 = vadd.f32 %v2212_v60, %v399_v29  ;;  %v712_v11 = vand.u32 2147483647, %v648_v54  ;;  %v1755_v54 = vld [vmem:[%s2883_s0 + $0x2a8] sm:$0xff] }
 0x12e   : > { %v1448_v52 = vmul.f32 %v1384_v10, %v856_v57  ;;  %v1272_v58 = vsub.f32 1.0, %v1208_v46  ;;  %v1031_v22 = vmax.f32 %v967_v50, 0.0  ;;  %v1176_v13 = vsub.f32 %v1112_v38, %v1773_v28 }
 0x12f   : > { %v631_v14 = vsub.f32 %v567_v43, %v1724_v48  ;;  %v535_v8 = vmax.f32 %v471_v4, 0.0  ;;  %v927_v15 = vmul.f32 %v1756_v20, %v2898_v12  ;;  %v776_v62 = vsub.f32 1.0, %v712_v11 }
 0x130   : > { %1858 = vmatprep.subr.mxu1 %v1448_v52  ;;  %v1336_v31 = vmax.f32 %v1272_v58, 0.0  ;;  %v1095_v9 = vmin.f32 %v1031_v22, 15.0  ;;  %v351_v39 = vmul.f32 %v2106_v17, %v202_v24  ;;  %v1240_v26 = vand.u32 2147483647, %v1176_v13 }
 0x131   : > { %v695_v53 = vand.u32 2147483647, %v631_v14  ;;  %v599_v56 = vmin.f32 %v535_v8, 15.0  ;;  %v999_v63 = vadd.f32 %v2253_v25, %v927_v15  ;;  %v840_v36 = vmax.f32 %v776_v62, 0.0 }
 0x132   : > { %v1400_v37 = vmul.f32 %v1336_v31, %v808_v55  ;;  %v1159_v34 = vsub.f32 %v1095_v9, %v1788_v59  ;;  %v423_v27 = vadd.f32 %v2214_v61, %v351_v39  ;;  %v1304_v49 = vsub.f32 1.0, %v1240_v26  ;;  %v1772_v55 = vld [vmem:[%s2883_s0 + $0x330] sm:$0xff] }
 0x133   : > { %v759_v21 = vsub.f32 1.0, %v695_v53  ;;  %v663_v0 = vsub.f32 %v599_v56, %v1724_v48  ;;  %v1063_v28 = vmax.f32 %v999_v63, 0.0  ;;  %v879_v20 = vmul.f32 %v1740_v35, %v2104_v16  ;;  %v201_v53 = vld [vmem:[%s2883_s0 + $0x28] sm:$0xff] }
 0x134   : > { %1824 = vmatpush3.msra.mxu0 %v1400_v37  ;;  %v1223_v30 = vand.u32 2147483647, %v1159_v34  ;;  %v487_v47 = vmax.f32 %v423_v27, 0.0  ;;  %v383_v42 = vmul.f32 %v2897_v7, %v202_v24  ;;  %v1368_v57 = vmax.f32 %v1304_v49, 0.0  ;;  %v1723_v37 = vld [vmem:[%s2883_s0 + $0x1a8] sm:$0xff] }
 0x135   : > { %v823_v18 = vmax.f32 %v759_v21, 0.0  ;;  %v727_v45 = vand.u32 2147483647, %v663_v0  ;;  %v1127_v44 = vmin.f32 %v1063_v28, 15.0  ;;  %v951_v1 = vadd.f32 %v2251_v23, %v879_v20 }
 0x136   : > { %v1287_v32 = vsub.f32 1.0, %v1223_v30  ;;  %v551_v51 = vmin.f32 %v487_v47, 15.0  ;;  %v455_v33 = vadd.f32 %v2212_v60, %v383_v42  ;;  %v1432_v5 = vmul.f32 %v1368_v57, %v840_v36  ;;  %v1787_v30 = vld [vmem:[%s2883_s0 + $0x3a8] sm:$0xff] }
 0x137   : > { %v791_v6 = vsub.f32 1.0, %v727_v45  ;;  %v1191_v19 = vsub.f32 %v1127_v44, %v1788_v59  ;;  %v911_v2 = vmul.f32 %v1740_v35, %v2898_v12  ;;  %v1015_v10 = vmax.f32 %v951_v1, 0.0  ;;  %v1739_v45 = vld [vmem:[%s2883_s0 + $0x228] sm:$0xff] }
 0x138   : > { %v1351_v3 = vmax.f32 %v1287_v32, 0.0  ;;  %v615_v29 = vsub.f32 %v551_v51, %v1708_v40  ;;  %v519_v46 = vmax.f32 %v455_v33, 0.0  ;;  %1859 = vmatpush3.msra.mxu1 %v1432_v5  ;;  %v366_v43 = vmul.f32 %v2106_v17, %v217_v41 }
 0x139   : > { %v855_v48 = vmax.f32 %v791_v6, 0.0  ;;  %v1255_v50 = vand.u32 2147483647, %v1191_v19  ;;  %v983_v38 = vadd.f32 %v2253_v25, %v911_v2  ;;  %v1079_v52 = vmin.f32 %v1015_v10, 15.0 }
 0x13a   : > { %v1415_v4 = vmul.f32 %v1351_v3, %v823_v18  ;;  %v679_v24 = vand.u32 2147483647, %v615_v29  ;;  %v583_v58 = vmin.f32 %v519_v46, 15.0  ;;  %v438_v13 = vadd.f32 %v2214_v61, %v366_v43 }
 0x13b   : > { %v1319_v11 = vsub.f32 1.0, %v1255_v50  ;;  %v1047_v22 = vmax.f32 %v983_v38, 0.0  ;;  %v894_v59 = vmul.f32 %v1755_v54, %v2104_v16  ;;  %v1143_v8 = vsub.f32 %v1079_v52, %v1772_v55  ;;  %v1707_v38 = vld [vmem:[%s2883_s0 + $0x128] sm:$0xff] }
 0x13c   : > { %1825 = vmatprep.subr.mxu0 %v1415_v4  ;;  %v743_v14 = vsub.f32 1.0, %v679_v24  ;;  %v647_v15 = vsub.f32 %v583_v58, %v1708_v40  ;;  %v398_v31 = vmul.f32 %v2897_v7, %v217_v41  ;;  %v502_v39 = vmax.f32 %v438_v13, 0.0  ;;  %v216_v24 = vld [vmem:[%s2883_s0 + $0xa0] sm:$0xff] }
 0x13d   : > { %v1383_v62 = vmax.f32 %v1319_v11, 0.0  ;;  %v1111_v9 = vmin.f32 %v1047_v22, 15.0  ;;  %v966_v26 = vadd.f32 %v2251_v23, %v894_v59  ;;  %v1207_v63 = vand.u32 2147483647, %v1143_v8 }
 0x13e   : > { %v807_v56 = vmax.f32 %v743_v14, 0.0  ;;  %v711_v35 = vand.u32 2147483647, %v647_v15  ;;  %v470_v36 = vadd.f32 %v2212_v60, %v398_v31  ;;  %v566_v49 = vmin.f32 %v502_v39, 15.0  ;;  %v1771_v31 = vld [vmem:[%s2883_s0 + $0x328] sm:$0xff]  ;;  %v1754_v39 = vld [vmem:[%s2883_s0 + $0x2a0] sm:$0xff] }
 0x13f   : > { %v1447_v34 = vmul.f32 %v1383_v62, %v855_v48  ;;  %v1175_v27 = vsub.f32 %v1111_v9, %v1772_v55  ;;  %v1030_v21 = vmax.f32 %v966_v26, 0.0  ;;  %v1271_v0 = vsub.f32 1.0, %v1207_v63 }
 0x140   : > { %v775_v28 = vsub.f32 1.0, %v711_v35  ;;  %v534_v47 = vmax.f32 %v470_v36, 0.0  ;;  %v926_v20 = vmul.f32 %v1755_v54, %v2898_v12  ;;  %v630_v57 = vsub.f32 %v566_v49, %v1723_v37 }
 0x141   : > { %1860 = vmatprep.subr.mxu1 %v1447_v34  ;;  %v1239_v42 = vand.u32 2147483647, %v1175_v27  ;;  %v1094_v18 = vmin.f32 %v1030_v21, 15.0  ;;  %v350_v44 = vmul.f32 %v2106_v17, %v201_v53  ;;  %v1335_v40 = vmax.f32 %v1271_v0, 0.0 }
 0x142   : > { %v839_v32 = vmax.f32 %v775_v28, 0.0  ;;  %v598_v51 = vmin.f32 %v534_v47, 15.0  ;;  %v998_v1 = vadd.f32 %v2253_v25, %v926_v20  ;;  %v694_v41 = vand.u32 2147483647, %v630_v57 }
 0x143   : > { %v1303_v33 = vsub.f32 1.0, %v1239_v42  ;;  %v1158_v5 = vsub.f32 %v1094_v18, %v1787_v30  ;;  %v422_v6 = vadd.f32 %v2214_v61, %v350_v44  ;;  %v1399_v19 = vmul.f32 %v1335_v40, %v807_v56  ;;  %v1722_v44 = vld [vmem:[%s2883_s0 + $0x1a0] sm:$0xff] }
 0x144   : > { %v662_v2 = vsub.f32 %v598_v51, %v1723_v37  ;;  %v1062_v3 = vmax.f32 %v998_v1, 0.0  ;;  %v878_v29 = vmul.f32 %v1739_v45, %v2104_v16  ;;  %v758_v46 = vsub.f32 1.0, %v694_v41  ;;  %v200_v41 = vld [vmem:[%s2883_s0 + $0x20] sm:$0xff] }
 0x145   : > { %v1367_v10 = vmax.f32 %v1303_v33, 0.0  ;;  %v1222_v54 = vand.u32 2147483647, %v1158_v5  ;;  %v486_v48 = vmax.f32 %v422_v6, 0.0  ;;  %1826 = vmatpush3.msra.mxu0 %v1399_v19  ;;  %v382_v4 = vmul.f32 %v2897_v7, %v201_v53 }
 0x146   : > { %v726_v50 = vand.u32 2147483647, %v662_v2  ;;  %v1126_v55 = vmin.f32 %v1062_v3, 15.0  ;;  %v950_v43 = vadd.f32 %v2251_v23, %v878_v29  ;;  %v822_v58 = vmax.f32 %v758_v46, 0.0  ;;  %v1786_v29 = vld [vmem:[%s2883_s0 + $0x3a0] sm:$0xff] }
 0x147   : > { %v1431_v52 = vmul.f32 %v1367_v10, %v839_v32  ;;  %v1286_v11 = vsub.f32 1.0, %v1222_v54  ;;  %v550_v22 = vmin.f32 %v486_v48, 15.0  ;;  %v454_v8 = vadd.f32 %v2212_v60, %v382_v4 }
 0x148   : > { %v790_v13 = vsub.f32 1.0, %v726_v50  ;;  %v1190_v59 = vsub.f32 %v1126_v55, %v1787_v30  ;;  %v1014_v14 = vmax.f32 %v950_v43, 0.0  ;;  %v910_v9 = vmul.f32 %v1739_v45, %v2898_v12 }
 0x149   : > { %1861 = vmatpush3.msra.mxu1 %v1431_v52  ;;  %v1350_v15 = vmax.f32 %v1286_v11, 0.0  ;;  %v614_v62 = vsub.f32 %v550_v22, %v1707_v38  ;;  %v365_v26 = vmul.f32 %v2106_v17, %v216_v24  ;;  %v518_v35 = vmax.f32 %v454_v8, 0.0 }
 0x14a   : > { %v854_v53 = vmax.f32 %v790_v13, 0.0  ;;  %v1254_v56 = vand.u32 2147483647, %v1190_v59  ;;  %v1078_v63 = vmin.f32 %v1014_v14, 15.0  ;;  %v982_v34 = vadd.f32 %v2253_v25, %v910_v9 }
 0x14b   : > { %v1414_v37 = vmul.f32 %v1350_v15, %v822_v58  ;;  %v678_v36 = vand.u32 2147483647, %v614_v62  ;;  %v437_v27 = vadd.f32 %v2214_v61, %v365_v26  ;;  %v582_v0 = vmin.f32 %v518_v35, 15.0  ;;  %v1738_v58 = vld [vmem:[%s2883_s0 + $0x220] sm:$0xff] }
 0x14c   : > { %v1318_v49 = vsub.f32 1.0, %v1254_v56  ;;  %v1142_v21 = vsub.f32 %v1078_v63, %v1771_v31  ;;  %v893_v28 = vmul.f32 %v1754_v39, %v2104_v16  ;;  %v1046_v47 = vmax.f32 %v982_v34, 0.0 }
 0x14d   : > { %1827 = vmatprep.subr.mxu0 %v1414_v37  ;;  %v742_v30 = vsub.f32 1.0, %v678_v36  ;;  %v501_v20 = vmax.f32 %v437_v27, 0.0  ;;  %v397_v42 = vmul.f32 %v2897_v7, %v216_v24  ;;  %v646_v45 = vsub.f32 %v582_v0, %v1707_v38  ;;  %v1706_v37 = vld [vmem:[%s2883_s0 + $0x120] sm:$0xff] }
 0x14e   : > { %v1382_v57 = vmax.f32 %v1318_v49, 0.0  ;;  %v1206_v18 = vand.u32 2147483647, %v1142_v21  ;;  %v965_v40 = vadd.f32 %v2251_v23, %v893_v28  ;;  %v1110_v51 = vmin.f32 %v1046_v47, 15.0  ;;  %v215_v21 = vld [vmem:[%s2883_s0 + $0x98] sm:$0xff] }
 0x14f   : > { %v806_v32 = vmax.f32 %v742_v30, 0.0  ;;  %v565_v1 = vmin.f32 %v501_v20, 15.0  ;;  %v469_v33 = vadd.f32 %v2212_v60, %v397_v42  ;;  %v710_v19 = vand.u32 2147483647, %v646_v45  ;;  %v1753_v45 = vld [vmem:[%s2883_s0 + $0x298] sm:$0xff] }
 0x150   : > { %v1446_v5 = vmul.f32 %v1382_v57, %v854_v53  ;;  %v1270_v6 = vsub.f32 1.0, %v1206_v18  ;;  %v1029_v2 = vmax.f32 %v965_v40, 0.0  ;;  %v1174_v3 = vsub.f32 %v1110_v51, %v1771_v31 }
 0x151   : > { %v629_v10 = vsub.f32 %v565_v1, %v1722_v44  ;;  %v533_v46 = vmax.f32 %v469_v33, 0.0  ;;  %v925_v54 = vmul.f32 %v1754_v39, %v2898_v12  ;;  %v774_v50 = vsub.f32 1.0, %v710_v19 }
 0x152   : > { %1862 = vmatprep.subr.mxu1 %v1446_v5  ;;  %v1334_v48 = vmax.f32 %v1270_v6, 0.0  ;;  %v1093_v55 = vmin.f32 %v1029_v2, 15.0  ;;  %v349_v38 = vmul.f32 %v2106_v17, %v200_v41  ;;  %v1238_v43 = vand.u32 2147483647, %v1174_v3 }
 0x153   : > { %v693_v4 = vand.u32 2147483647, %v629_v10  ;;  %v597_v24 = vmin.f32 %v533_v46, 15.0  ;;  %v997_v52 = vadd.f32 %v2253_v25, %v925_v54  ;;  %v838_v22 = vmax.f32 %v774_v50, 0.0 }
 0x154   : > { %v1398_v11 = vmul.f32 %v1334_v48, %v806_v32  ;;  %v1157_v13 = vsub.f32 %v1093_v55, %v1786_v29  ;;  %v421_v59 = vadd.f32 %v2214_v61, %v349_v38  ;;  %v1302_v14 = vsub.f32 1.0, %v1238_v43  ;;  %v1770_v32 = vld [vmem:[%s2883_s0 + $0x320] sm:$0xff] }
 0x155   : > { %v757_v8 = vsub.f32 1.0, %v693_v4  ;;  %v661_v15 = vsub.f32 %v597_v24, %v1722_v44  ;;  %v1061_v31 = vmax.f32 %v997_v52, 0.0  ;;  %v877_v39 = vmul.f32 %v1738_v58, %v2104_v16  ;;  %v199_v4 = vld [vmem:[%s2883_s0 + $0x18] sm:$0xff] }
 0x156   : > { %1828 = vmatpush3.msra.mxu0 %v1398_v11  ;;  %v1221_v62 = vand.u32 2147483647, %v1157_v13  ;;  %v485_v9 = vmax.f32 %v421_v59, 0.0  ;;  %v381_v26 = vmul.f32 %v2897_v7, %v200_v41  ;;  %v1366_v53 = vmax.f32 %v1302_v14, 0.0  ;;  %v1721_v11 = vld [vmem:[%s2883_s0 + $0x198] sm:$0xff] }
 0x157   : > { %v821_v56 = vmax.f32 %v757_v8, 0.0  ;;  %v725_v63 = vand.u32 2147483647, %v661_v15  ;;  %v1125_v35 = vmin.f32 %v1061_v31, 15.0  ;;  %v949_v27 = vadd.f32 %v2251_v23, %v877_v39 }
 0x158   : > { %v1285_v36 = vsub.f32 1.0, %v1221_v62  ;;  %v549_v34 = vmin.f32 %v485_v9, 15.0  ;;  %v453_v49 = vadd.f32 %v2212_v60, %v381_v26  ;;  %v1430_v0 = vmul.f32 %v1366_v53, %v838_v22  ;;  %v1785_v62 = vld [vmem:[%s2883_s0 + $0x398] sm:$0xff] }
 0x159   : > { %v789_v28 = vsub.f32 1.0, %v725_v63  ;;  %v1189_v30 = vsub.f32 %v1125_v35, %v1786_v29  ;;  %v909_v47 = vmul.f32 %v1738_v58, %v2898_v12  ;;  %v1013_v57 = vmax.f32 %v949_v27, 0.0  ;;  %v1737_v63 = vld [vmem:[%s2883_s0 + $0x218] sm:$0xff] }
 0x15a   : > { %v1349_v20 = vmax.f32 %v1285_v36, 0.0  ;;  %v613_v42 = vsub.f32 %v549_v34, %v1706_v37  ;;  %v517_v18 = vmax.f32 %v453_v49, 0.0  ;;  %1863 = vmatpush3.msra.mxu1 %v1430_v0  ;;  %v364_v1 = vmul.f32 %v2106_v17, %v215_v21 }
 0x15b   : > { %v853_v44 = vmax.f32 %v789_v28, 0.0  ;;  %v1253_v40 = vand.u32 2147483647, %v1189_v30  ;;  %v981_v51 = vadd.f32 %v2253_v25, %v909_v47  ;;  %v1077_v5 = vmin.f32 %v1013_v57, 15.0 }
 0x15c   : > { %v1413_v33 = vmul.f32 %v1349_v20, %v821_v56  ;;  %v677_v41 = vand.u32 2147483647, %v613_v42  ;;  %v581_v6 = vmin.f32 %v517_v18, 15.0  ;;  %v436_v3 = vadd.f32 %v2214_v61, %v364_v1 }
 0x15d   : > { %v1317_v19 = vsub.f32 1.0, %v1253_v40  ;;  %v1045_v2 = vmax.f32 %v981_v51, 0.0  ;;  %v892_v29 = vmul.f32 %v1753_v45, %v2104_v16  ;;  %v1141_v46 = vsub.f32 %v1077_v5, %v1770_v32  ;;  %v1705_v51 = vld [vmem:[%s2883_s0 + $0x118] sm:$0xff] }
 0x15e   : > { %1829 = vmatprep.subr.mxu0 %v1413_v33  ;;  %v741_v10 = vsub.f32 1.0, %v677_v41  ;;  %v645_v54 = vsub.f32 %v581_v6, %v1706_v37  ;;  %v396_v48 = vmul.f32 %v2897_v7, %v215_v21  ;;  %v500_v38 = vmax.f32 %v436_v3, 0.0  ;;  %v214_v41 = vld [vmem:[%s2883_s0 + $0x90] sm:$0xff] }
 0x15f   : > { %v1381_v50 = vmax.f32 %v1317_v19, 0.0  ;;  %v1109_v55 = vmin.f32 %v1045_v2, 15.0  ;;  %v964_v43 = vadd.f32 %v2251_v23, %v892_v29  ;;  %v1205_v52 = vand.u32 2147483647, %v1141_v46 }
 0x160   : > { %v805_v24 = vmax.f32 %v741_v10, 0.0  ;;  %v709_v58 = vand.u32 2147483647, %v645_v54  ;;  %v468_v22 = vadd.f32 %v2212_v60, %v396_v48  ;;  %v564_v14 = vmin.f32 %v500_v38, 15.0  ;;  %v1769_v48 = vld [vmem:[%s2883_s0 + $0x318] sm:$0xff]  ;;  %v1752_v38 = vld [vmem:[%s2883_s0 + $0x290] sm:$0xff] }
 0x161   : > { %v1445_v13 = vmul.f32 %v1381_v50, %v853_v44  ;;  %v1173_v59 = vsub.f32 %v1109_v55, %v1770_v32  ;;  %v1028_v8 = vmax.f32 %v964_v43, 0.0  ;;  %v1269_v15 = vsub.f32 1.0, %v1205_v52 }
 0x162   : > { %v773_v31 = vsub.f32 1.0, %v709_v58  ;;  %v532_v9 = vmax.f32 %v468_v22, 0.0  ;;  %v924_v39 = vmul.f32 %v1753_v45, %v2898_v12  ;;  %v628_v53 = vsub.f32 %v564_v14, %v1721_v11 }
 0x163   : > { %1864 = vmatprep.subr.mxu1 %v1445_v13  ;;  %v1237_v26 = vand.u32 2147483647, %v1173_v59  ;;  %v1092_v56 = vmin.f32 %v1028_v8, 15.0  ;;  %v348_v35 = vmul.f32 %v2106_v17, %v199_v4  ;;  %v1333_v37 = vmax.f32 %v1269_v15, 0.0 }
 0x164   : > { %v837_v36 = vmax.f32 %v773_v31, 0.0  ;;  %v596_v34 = vmin.f32 %v532_v9, 15.0  ;;  %v996_v27 = vadd.f32 %v2253_v25, %v924_v39  ;;  %v692_v21 = vand.u32 2147483647, %v628_v53 }
 0x165   : > { %v1301_v49 = vsub.f32 1.0, %v1237_v26  ;;  %v1156_v0 = vsub.f32 %v1092_v56, %v1785_v62  ;;  %v420_v28 = vadd.f32 %v2214_v61, %v348_v35  ;;  %v1397_v30 = vmul.f32 %v1333_v37, %v805_v24  ;;  %v1720_v35 = vld [vmem:[%s2883_s0 + $0x190] sm:$0xff] }
 0x166   : > { %v660_v47 = vsub.f32 %v596_v34, %v1721_v11  ;;  %v1060_v20 = vmax.f32 %v996_v27, 0.0  ;;  %v876_v42 = vmul.f32 %v1737_v63, %v2104_v16  ;;  %v756_v18 = vsub.f32 1.0, %v692_v21  ;;  %v198_v21 = vld [vmem:[%s2883_s0 + $0x10] sm:$0xff] }
 0x167   : > { %v1365_v57 = vmax.f32 %v1301_v49, 0.0  ;;  %v1220_v45 = vand.u32 2147483647, %v1156_v0  ;;  %v484_v44 = vmax.f32 %v420_v28, 0.0  ;;  %1830 = vmatpush3.msra.mxu0 %v1397_v30  ;;  %v380_v33 = vmul.f32 %v2897_v7, %v199_v4 }
 0x168   : > { %v724_v40 = vand.u32 2147483647, %v660_v47  ;;  %v1124_v32 = vmin.f32 %v1060_v20, 15.0  ;;  %v948_v1 = vadd.f32 %v2251_v23, %v876_v42  ;;  %v820_v6 = vmax.f32 %v756_v18, 0.0  ;;  %v1784_v42 = vld [vmem:[%s2883_s0 + $0x390] sm:$0xff] }
 0x169   : > { %v1429_v5 = vmul.f32 %v1365_v57, %v837_v36  ;;  %v1284_v19 = vsub.f32 1.0, %v1220_v45  ;;  %v548_v2 = vmin.f32 %v484_v44, 15.0  ;;  %v452_v46 = vadd.f32 %v2212_v60, %v380_v33 }
 0x16a   : > { %v788_v3 = vsub.f32 1.0, %v724_v40  ;;  %v1188_v29 = vsub.f32 %v1124_v32, %v1785_v62  ;;  %v1012_v10 = vmax.f32 %v948_v1, 0.0  ;;  %v908_v55 = vmul.f32 %v1737_v63, %v2898_v12 }
 0x16b   : > { %1865 = vmatpush3.msra.mxu1 %v1429_v5  ;;  %v1348_v54 = vmax.f32 %v1284_v19, 0.0  ;;  %v612_v50 = vsub.f32 %v548_v2, %v1705_v51  ;;  %v363_v43 = vmul.f32 %v2106_v17, %v214_v41  ;;  %v516_v58 = vmax.f32 %v452_v46, 0.0 }
 0x16c   : > { %v852_v4 = vmax.f32 %v788_v3, 0.0  ;;  %v1252_v24 = vand.u32 2147483647, %v1188_v29  ;;  %v1076_v52 = vmin.f32 %v1012_v10, 15.0  ;;  %v980_v13 = vadd.f32 %v2253_v25, %v908_v55 }
 0x16d   : > { %v1412_v11 = vmul.f32 %v1348_v54, %v820_v6  ;;  %v676_v22 = vand.u32 2147483647, %v612_v50  ;;  %v435_v59 = vadd.f32 %v2214_v61, %v363_v43  ;;  %v580_v15 = vmin.f32 %v516_v58, 15.0  ;;  %v1736_v6 = vld [vmem:[%s2883_s0 + $0x210] sm:$0xff] }
 0x16e   : > { %v1316_v14 = vsub.f32 1.0, %v1252_v24  ;;  %v1140_v8 = vsub.f32 %v1076_v52, %v1769_v48  ;;  %v891_v31 = vmul.f32 %v1752_v38, %v2104_v16  ;;  %v1044_v9 = vmax.f32 %v980_v13, 0.0 }
 0x16f   : > { %1831 = vmatprep.subr.mxu0 %v1412_v11  ;;  %v740_v62 = vsub.f32 1.0, %v676_v22  ;;  %v499_v39 = vmax.f32 %v435_v59, 0.0  ;;  %v395_v26 = vmul.f32 %v2897_v7, %v214_v41  ;;  %v644_v63 = vsub.f32 %v580_v15, %v1705_v51  ;;  %v1704_v11 = vld [vmem:[%s2883_s0 + $0x110] sm:$0xff] }
 0x170   : > { %v1380_v53 = vmax.f32 %v1316_v14, 0.0  ;;  %v1204_v56 = vand.u32 2147483647, %v1140_v8  ;;  %v963_v37 = vadd.f32 %v2251_v23, %v891_v31  ;;  %v1108_v34 = vmin.f32 %v1044_v9, 15.0  ;;  %v213_v8 = vld [vmem:[%s2883_s0 + $0x88] sm:$0xff] }
 0x171   : > { %v804_v36 = vmax.f32 %v740_v62, 0.0  ;;  %v563_v27 = vmin.f32 %v499_v39, 15.0  ;;  %v467_v49 = vadd.f32 %v2212_v60, %v395_v26  ;;  %v708_v30 = vand.u32 2147483647, %v644_v63  ;;  %v1751_v63 = vld [vmem:[%s2883_s0 + $0x288] sm:$0xff] }
 0x172   : > { %v1444_v0 = vmul.f32 %v1380_v53, %v852_v4  ;;  %v1268_v28 = vsub.f32 1.0, %v1204_v56  ;;  %v1027_v47 = vmax.f32 %v963_v37, 0.0  ;;  %v1172_v20 = vsub.f32 %v1108_v34, %v1769_v48 }
 0x173   : > { %v627_v57 = vsub.f32 %v563_v27, %v1720_v35  ;;  %v531_v18 = vmax.f32 %v467_v49, 0.0  ;;  %v923_v45 = vmul.f32 %v1752_v38, %v2898_v12  ;;  %v772_v40 = vsub.f32 1.0, %v708_v30 }
 0x174   : > { %1866 = vmatprep.subr.mxu1 %v1444_v0  ;;  %v1332_v44 = vmax.f32 %v1268_v28, 0.0  ;;  %v1091_v32 = vmin.f32 %v1027_v47, 15.0  ;;  %v347_v51 = vmul.f32 %v2106_v17, %v198_v21  ;;  %v1236_v1 = vand.u32 2147483647, %v1172_v20 }
 0x175   : > { %v691_v33 = vand.u32 2147483647, %v627_v57  ;;  %v595_v41 = vmin.f32 %v531_v18, 15.0  ;;  %v995_v5 = vadd.f32 %v2253_v25, %v923_v45  ;;  %v836_v2 = vmax.f32 %v772_v40, 0.0 }
 0x176   : > { %v1396_v19 = vmul.f32 %v1332_v44, %v804_v36  ;;  %v1155_v3 = vsub.f32 %v1091_v32, %v1784_v42  ;;  %v419_v29 = vadd.f32 %v2214_v61, %v347_v51  ;;  %v1300_v10 = vsub.f32 1.0, %v1236_v1  ;;  %v1768_v36 = vld [vmem:[%s2883_s0 + $0x310] sm:$0xff] }
 0x177   : > { %v755_v46 = vsub.f32 1.0, %v691_v33  ;;  %v659_v54 = vsub.f32 %v595_v41, %v1720_v35  ;;  %v1059_v48 = vmax.f32 %v995_v5, 0.0  ;;  %v875_v38 = vmul.f32 %v1736_v6, %v2104_v16  ;;  %v197_v33 = vld [vmem:[%s2883_s0 + $0x8] sm:$0xff] }
 0x178   : > { %1832 = vmatpush3.msra.mxu0 %v1396_v19  ;;  %v1219_v50 = vand.u32 2147483647, %v1155_v3  ;;  %v483_v55 = vmax.f32 %v419_v29, 0.0  ;;  %v379_v43 = vmul.f32 %v2897_v7, %v198_v21  ;;  %v1364_v4 = vmax.f32 %v1300_v10, 0.0  ;;  %v1719_v19 = vld [vmem:[%s2883_s0 + $0x188] sm:$0xff] }
 0x179   : > { %v819_v24 = vmax.f32 %v755_v46, 0.0  ;;  %v723_v52 = vand.u32 2147483647, %v659_v54  ;;  %v1123_v58 = vmin.f32 %v1059_v48, 15.0  ;;  %v947_v59 = vadd.f32 %v2251_v23, %v875_v38 }
 0x17a   : > { %v1283_v22 = vsub.f32 1.0, %v1219_v50  ;;  %v547_v13 = vmin.f32 %v483_v55, 15.0  ;;  %v451_v14 = vadd.f32 %v2212_v60, %v379_v43  ;;  %v1428_v15 = vmul.f32 %v1364_v4, %v836_v2  ;;  %v1783_v50 = vld [vmem:[%s2883_s0 + $0x388] sm:$0xff] }
 0x17b   : > { %v787_v31 = vsub.f32 1.0, %v723_v52  ;;  %v1187_v62 = vsub.f32 %v1123_v58, %v1784_v42  ;;  %v907_v9 = vmul.f32 %v1736_v6, %v2898_v12  ;;  %v1011_v53 = vmax.f32 %v947_v59, 0.0  ;;  %v1735_v52 = vld [vmem:[%s2883_s0 + $0x208] sm:$0xff] }
 0x17c   : > { %v1347_v39 = vmax.f32 %v1283_v22, 0.0  ;;  %v611_v26 = vsub.f32 %v547_v13, %v1704_v11  ;;  %v515_v56 = vmax.f32 %v451_v14, 0.0  ;;  %1867 = vmatpush3.msra.mxu1 %v1428_v15  ;;  %v362_v27 = vmul.f32 %v2106_v17, %v213_v8 }
 0x17d   : > { %v851_v35 = vmax.f32 %v787_v31, 0.0  ;;  %v1251_v37 = vand.u32 2147483647, %v1187_v62  ;;  %v979_v34 = vadd.f32 %v2253_v25, %v907_v9  ;;  %v1075_v0 = vmin.f32 %v1011_v53, 15.0 }
 0x17e   : > { %v1411_v49 = vmul.f32 %v1347_v39, %v819_v24  ;;  %v675_v21 = vand.u32 2147483647, %v611_v26  ;;  %v579_v28 = vmin.f32 %v515_v56, 15.0  ;;  %v434_v20 = vadd.f32 %v2214_v61, %v362_v27 }
 0x17f   : > { %v1315_v30 = vsub.f32 1.0, %v1251_v37  ;;  %v1043_v47 = vmax.f32 %v979_v34, 0.0  ;;  %v890_v42 = vmul.f32 %v1751_v63, %v2104_v16  ;;  %v1139_v18 = vsub.f32 %v1075_v0, %v1768_v36  ;;  %v1703_v34 = vld [vmem:[%s2883_s0 + $0x108] sm:$0xff] }
 0x180   : > { %1833 = vmatprep.subr.mxu0 %v1411_v49  ;;  %v739_v57 = vsub.f32 1.0, %v675_v21  ;;  %v643_v45 = vsub.f32 %v579_v28, %v1704_v11  ;;  %v394_v44 = vmul.f32 %v2897_v7, %v213_v8  ;;  %v498_v51 = vmax.f32 %v434_v20, 0.0  ;;  %v212_v21 = vld [vmem:[%s2883_s0 + $0x80] sm:$0xff] }
 0x181   : > { %v1379_v40 = vmax.f32 %v1315_v30, 0.0  ;;  %v1107_v32 = vmin.f32 %v1043_v47, 15.0  ;;  %v962_v1 = vadd.f32 %v2251_v23, %v890_v42  ;;  %v1203_v5 = vand.u32 2147483647, %v1139_v18 }
 0x182   : > { %v803_v41 = vmax.f32 %v739_v57, 0.0  ;;  %v707_v6 = vand.u32 2147483647, %v643_v45  ;;  %v466_v2 = vadd.f32 %v2212_v60, %v394_v44  ;;  %v562_v10 = vmin.f32 %v498_v51, 15.0  ;;  %v1767_v44 = vld [vmem:[%s2883_s0 + $0x308] sm:$0xff]  ;;  %v1750_v51 = vld [vmem:[%s2883_s0 + $0x280] sm:$0xff] }
 0x183   : > { %v1443_v3 = vmul.f32 %v1379_v40, %v851_v35  ;;  %v1171_v29 = vsub.f32 %v1107_v32, %v1768_v36  ;;  %v1026_v46 = vmax.f32 %v962_v1, 0.0  ;;  %v1267_v54 = vsub.f32 1.0, %v1203_v5 }
 0x184   : > { %v771_v48 = vsub.f32 1.0, %v707_v6  ;;  %v530_v55 = vmax.f32 %v466_v2, 0.0  ;;  %v922_v38 = vmul.f32 %v1751_v63, %v2898_v12  ;;  %v626_v4 = vsub.f32 %v562_v10, %v1719_v19 }
 0x185   : > { %1868 = vmatprep.subr.mxu1 %v1443_v3  ;;  %v1235_v43 = vand.u32 2147483647, %v1171_v29  ;;  %v1090_v24 = vmin.f32 %v1026_v46, 15.0  ;;  %v346_v58 = vmul.f32 %v2106_v17, %v197_v33  ;;  %v1331_v11 = vmax.f32 %v1267_v54, 0.0 }
 0x186   : > { %v835_v22 = vmax.f32 %v771_v48, 0.0  ;;  %v594_v13 = vmin.f32 %v530_v55, 15.0  ;;  %v994_v59 = vadd.f32 %v2253_v25, %v922_v38  ;;  %v690_v8 = vand.u32 2147483647, %v626_v4 }
 0x187   : > { %v1299_v14 = vsub.f32 1.0, %v1235_v43  ;;  %v1154_v15 = vsub.f32 %v1090_v24, %v1783_v50  ;;  %v418_v31 = vadd.f32 %v2214_v61, %v346_v58  ;;  %v1395_v62 = vmul.f32 %v1331_v11, %v803_v41  ;;  %v1718_v58 = vld [vmem:[%s2883_s0 + $0x180] sm:$0xff] }
 0x188   : > { %v658_v9 = vsub.f32 %v594_v13, %v1719_v19  ;;  %v1058_v39 = vmax.f32 %v994_v59, 0.0  ;;  %v874_v26 = vmul.f32 %v1735_v52, %v2104_v16  ;;  %v754_v56 = vsub.f32 1.0, %v690_v8  ;;  %v196_v8 = vld [vmem:[%s2883_s0] sm:$0xff] }
 0x189   : > { %v1363_v53 = vmax.f32 %v1299_v14, 0.0  ;;  %v1218_v63 = vand.u32 2147483647, %v1154_v15  ;;  %v482_v35 = vmax.f32 %v418_v31, 0.0  ;;  %1834 = vmatpush3.msra.mxu0 %v1395_v62  ;;  %v378_v49 = vmul.f32 %v2897_v7, %v197_v33 }
 0x18a   : > { %v722_v37 = vand.u32 2147483647, %v658_v9  ;;  %v1122_v36 = vmin.f32 %v1058_v39, 15.0  ;;  %v946_v27 = vadd.f32 %v2251_v23, %v874_v26  ;;  %v818_v28 = vmax.f32 %v754_v56, 0.0  ;;  %v1782_v26 = vld [vmem:[%s2883_s0 + $0x380] sm:$0xff] }
 0x18b   : > { %v1427_v0 = vmul.f32 %v1363_v53, %v835_v22  ;;  %v1282_v30 = vsub.f32 1.0, %v1218_v63  ;;  %v546_v47 = vmin.f32 %v482_v35, 15.0  ;;  %v450_v18 = vadd.f32 %v2212_v60, %v378_v49 }
 0x18c   : > { %v786_v20 = vsub.f32 1.0, %v722_v37  ;;  %v1186_v42 = vsub.f32 %v1122_v36, %v1783_v50  ;;  %v1010_v57 = vmax.f32 %v946_v27, 0.0  ;;  %v906_v32 = vmul.f32 %v1735_v52, %v2898_v12 }
 0x18d   : > { %1869 = vmatpush3.msra.mxu1 %v1427_v0  ;;  %v1346_v45 = vmax.f32 %v1282_v30, 0.0  ;;  %v610_v40 = vsub.f32 %v546_v47, %v1703_v34  ;;  %v361_v1 = vmul.f32 %v2106_v17, %v212_v21  ;;  %v514_v6 = vmax.f32 %v450_v18, 0.0  ;;  %v2815_v30 = vld [vmem:[%s2803_s19] sm:$0xff] }
 0x18e   : > { %v850_v33 = vmax.f32 %v786_v20, 0.0  ;;  %v1250_v41 = vand.u32 2147483647, %v1186_v42  ;;  %v1074_v5 = vmin.f32 %v1010_v57, 15.0  ;;  %v978_v3 = vadd.f32 %v2253_v25, %v906_v32 }
 0x18f   : > { %v1410_v19 = vmul.f32 %v1346_v45, %v818_v28  ;;  %v674_v2 = vand.u32 2147483647, %v610_v40  ;;  %v433_v29 = vadd.f32 %v2214_v61, %v361_v1  ;;  %v578_v54 = vmin.f32 %v514_v6, 15.0 }
 0x190   : > { %v1314_v10 = vsub.f32 1.0, %v1250_v41  ;;  %v1138_v46 = vsub.f32 %v1074_v5, %v1767_v44  ;;  %v889_v48 = vmul.f32 %v1750_v51, %v2104_v16  ;;  %v1042_v55 = vmax.f32 %v978_v3, 0.0 }
 0x191   : > { %1835 = vmatprep.subr.mxu0 %v1410_v19  ;;  %v738_v50 = vsub.f32 1.0, %v674_v2  ;;  %v497_v38 = vmax.f32 %v433_v29, 0.0  ;;  %v393_v43 = vmul.f32 %v2897_v7, %v212_v21  ;;  %v642_v52 = vsub.f32 %v578_v54, %v1703_v34  ;;  %v1734_v34 = vld [vmem:[%s2883_s0 + $0x200] sm:$0xff]  ;;  %v1458_v29 = vld [vmem:[%s2803_s19 + $0x8] sm:$0xff]  ;;  %s1930_s19 = scalar_lea.vmem %s2836_s8, 128 }
 0x192   : > { %v1378_v4 = vmax.f32 %v1314_v10, 0.0  ;;  %v1202_v24 = vand.u32 2147483647, %v1138_v46  ;;  %v961_v11 = vadd.f32 %v2251_v23, %v889_v48  ;;  %v1106_v13 = vmin.f32 %v1042_v55, 15.0  ;;  %p1931_p11 = scmp.ne.s32.totalorder %s2836_s8, %s1930_s19  ;;  %p1938_p1 = scmp.lt.s32.totalorder %s1936_s25, %s1930_s19 }
 0x193   : > { %v802_v22 = vmax.f32 %v738_v50, 0.0  ;;  %v561_v59 = vmin.f32 %v497_v38, 15.0  ;;  %v465_v14 = vadd.f32 %v2212_v60, %v393_v43  ;;  %v706_v62 = vand.u32 2147483647, %v642_v52 }
 0x194   : > { %v1442_v15 = vmul.f32 %v1378_v4, %v850_v33  ;;  %v1266_v31 = vsub.f32 1.0, %v1202_v24  ;;  %v1025_v9 = vmax.f32 %v961_v11, 0.0  ;;  %v1170_v39 = vsub.f32 %v1106_v13, %v1767_v44  ;;  %p1932_p12 = pnand %p1931_p11, %p2057_p5  ;;  %p1939_p2 = por %p1938_p1, %p1937_p0 }
 0x195   : > { %v625_v53 = vsub.f32 %v561_v59, %v1718_v58  ;;  %v529_v56 = vmax.f32 %v465_v14, 0.0  ;;  %v921_v63 = vmul.f32 %v1750_v51, %v2898_v12  ;;  %v770_v37 = vsub.f32 1.0, %v706_v62 }
 0x196   : > { %1870 = vmatprep.subr.mxu1 %v1442_v15  ;;  %v1330_v35 = vmax.f32 %v1266_v31, 0.0  ;;  %v1089_v36 = vmin.f32 %v1025_v9, 15.0  ;;  %v345_v27 = vmul.f32 %v2106_v17, %v196_v8  ;;  %v1234_v49 = vand.u32 2147483647, %v1170_v39  ;;  %p1933_p13 = pneg %p1932_p12 }
 0x197   : > { %v689_v21 = vand.u32 2147483647, %v625_v53  ;;  %v593_v0 = vmin.f32 %v529_v56, 15.0  ;;  %v993_v28 = vadd.f32 %v2253_v25, %v921_v63  ;;  %v873_v17 = vmul.f32 %v1734_v34, %v2104_v16 }
 0x198   : > { %v1394_v47 = vmul.f32 %v1330_v35, %v802_v22  ;;  %v1153_v20 = vsub.f32 %v1089_v36, %v1782_v26  ;;  %v417_v42 = vadd.f32 %v2214_v61, %v345_v27  ;;  %v1298_v57 = vsub.f32 1.0, %v1234_v49  ;;  %v1702_v61 = vld [vmem:[%s2883_s0 + $0x100] sm:$0xff]  ;;  %p1940_p3 = pnand %p1939_p2, %p1933_p13 }
 0x199   : > { %v753_v18 = vsub.f32 1.0, %v689_v21  ;;  %v657_v45 = vsub.f32 %v593_v0, %v1718_v58  ;;  %v1057_v44 = vmax.f32 %v993_v28, 0.0  ;;  %v1460_v51 = vcombine.high %v2815_v30, %v2815_v30 }
 0x19a   : > { %1836 = vmatpush3.msra.mxu0 %v1394_v47  ;;  %v1217_v40 = vand.u32 2147483647, %v1153_v20  ;;  %v481_v32 = vmax.f32 %v417_v42, 0.0  ;;  %v834_v1 = vmax.f32 %v770_v37, 0.0  ;;  %v1362_v33 = vmax.f32 %v1298_v57, 0.0 }
 0x19b   : > { %v721_v41 = vand.u32 2147483647, %v657_v45  ;;  %v1121_v5 = vmin.f32 %v1057_v44, 15.0  ;;  %v945_v2 = vadd.f32 %v2251_v23, %v873_v17  ;;  %1526 = vmatprep.mubr.f32.mxu0 %v1460_v51  ;;  %v377_v3 = vmul.f32 %v2897_v7, %v196_v8  ;;  %v1766_v23 = vld [vmem:[%s2883_s0 + $0x300] sm:$0xff] }
 0x19c   : > { %v1281_v6 = vsub.f32 1.0, %v1217_v40  ;;  %v545_v19 = vmin.f32 %v481_v32, 15.0  ;;  %v1426_v16 = vmul.f32 %v1362_v33, %v834_v1  ;;  %v817_v10 = vmax.f32 %v753_v18, 0.0 }
 0x19d   : > { %v1185_v46 = vsub.f32 %v1121_v5, %v1782_v26  ;;  %v905_v54 = vmul.f32 %v1734_v34, %v2898_v12  ;;  %v1009_v55 = vmax.f32 %v945_v2, 0.0  ;;  %v449_v38 = vadd.f32 %v2212_v60, %v377_v3 }
 0x19e   : > { %v1345_v48 = vmax.f32 %v1281_v6, 0.0  ;;  %v609_v50 = vsub.f32 %v545_v19, %v1702_v61  ;;  %1871 = vmatpush3.msra.mxu1 %v1426_v16  ;;  %v785_v43 = vsub.f32 1.0, %v721_v41  ;;  %v1533_v24 = vcombine.high %v1458_v29, %v1458_v29 }
 0x19f   : > { %v1249_v4 = vand.u32 2147483647, %v1185_v46  ;;  %v977_v7 = vadd.f32 %v2253_v25, %v905_v54  ;;  %v1073_v11 = vmin.f32 %v1009_v55, 15.0  ;;  %v513_v22 = vmax.f32 %v449_v38, 0.0 }
 0x1a0   : > { %v1409_v52 = vmul.f32 %v1345_v48, %v817_v10  ;;  %v673_v58 = vand.u32 2147483647, %v609_v50  ;;  %1599 = vmatprep.mubr.f32.mxu1 %v1533_v24  ;;  %v849_v14 = vmax.f32 %v785_v43, 0.0 }
 0x1a1   : > { %v1313_v12 = vsub.f32 1.0, %v1249_v4  ;;  %v1041_v13 = vmax.f32 %v977_v7, 0.0  ;;  %v1137_v59 = vsub.f32 %v1073_v11, %v1766_v23  ;;  %v577_v60 = vmin.f32 %v513_v22, 15.0 }
 0x1a2   : > { %1837 = vmatprep.subr.mxu0 %v1409_v52  ;;  %v737_v31 = vsub.f32 1.0, %v673_v58 }
 0x1a3   : > { %v1377_v8 = vmax.f32 %v1313_v12, 0.0  ;;  %v1105_v15 = vmin.f32 %v1041_v13, 15.0  ;;  %v1201_v62 = vand.u32 2147483647, %v1137_v59  ;;  %v641_v9 = vsub.f32 %v577_v60, %v1702_v61 }
 0x1a4   : > { %v801_v63 = vmax.f32 %v737_v31, 0.0 }
 0x1a5   : > { %v1441_v39 = vmul.f32 %v1377_v8, %v849_v14  ;;  %v1169_v26 = vsub.f32 %v1105_v15, %v1766_v23  ;;  %v1265_v25 = vsub.f32 1.0, %v1201_v62  ;;  %v705_v53 = vand.u32 2147483647, %v641_v9 }
 0x1a7   : > { %1872 = vmatprep.subr.mxu1 %v1441_v39  ;;  %v1233_v56 = vand.u32 2147483647, %v1169_v26  ;;  %v1329_v35 = vmax.f32 %v1265_v25, 0.0  ;;  %v769_v37 = vsub.f32 1.0, %v705_v53 }
 0x1a9   : > { %v1297_v36 = vsub.f32 1.0, %v1233_v56  ;;  %v1393_v34 = vmul.f32 %v1329_v35, %v801_v63  ;;  %v833_v27 = vmax.f32 %v769_v37, 0.0 }
 0x1ab   : > { %v1361_v49 = vmax.f32 %v1297_v36, 0.0  ;;  %1838 = vmatpush3.msra.mxu0 %v1393_v34 }
 0x1ac   : > { %1527 = vmatmul.mubr.f32.vlgmr.msra.gmra.mxu0 %v2815_v30 }
 0x1ad   : > { %v1425_v21 = vmul.f32 %v1361_v49, %v833_v27 }
 0x1af   : > { %1873 = vmatpush3.msra.mxu1 %v1425_v21 }
 0x1b0   : > { %1600 = vmatmul.mubr.f32.vlgmr.msra.gmra.mxu1 %v1458_v29 }
 0x26c   : > { %v1839_v0 = vpop.f32.mrf.mxu0 }
 0x26e   : > { %v1840_v28 = vpop.f32.mrf.mxu0 }
 0x26f   : > { %v1841_v20 = vadd.f32 %v1840_v28, %v1839_v0 }
 0x270   : > { %v1874_v47 = vpop.f32.mrf.mxu1 }
 0x271   : > { %1606 = vst.msk [vmem:[%s180_s7] sm:$0xf] %vm1605_vm0, %v1841_v20 }
 0x272   : > { %v1875_v30 = vpop.f32.mrf.mxu1 }
 0x273   : > { %v1876_v42 = vadd.f32 %v1875_v30, %v1874_v47 }
 0x275   : > { %1607 = vst.msk [vmem:[%s180_s7 + $0x4] sm:$0xf] %vm1605_vm0, %v1876_v42 }
 0x276   : > { %1943 = shalt.err (!%p1940_p3)
}
 0x277   : > { %s1944_s26 = scalar_lea.hbm %s2841_s24, 128  ;;  %s1948_s29 = scalar_lea.hbm %s2886_s3, 256 }
 0x278   : > { %p1945_p4 = scmp.ne.s32.totalorder %s2841_s24, %s1944_s26  ;;  %p1949_p9 = scmp.lt.s32.totalorder %s2841_s24, %s2886_s3 }
 0x279   : > { %p1950_p10 = scmp.lt.s32.totalorder %s1948_s29, %s1944_s26 }
 0x27a   : > { %p1946_p7 = pnand %p1945_p4, %p2057_p5 }
 0x27b   : > { %p1951_p11 = por %p1950_p10, %p1949_p9 }
 0x27c   : > { %p1947_p8 = pneg %p1946_p7 }
 0x27e   : > { %p1952_p12 = pnand %p1951_p11, %p1947_p8 }
 0x280   : > { %1955 = shalt.err (!%p1952_p12)
}
 0x281   : > { %s1997_s5 = smov 64   ;;  %s1998_s6 = smov 4  }
 0x282   : > { %1877 = dma.vmem_to_hbm [thread:$0]  (%p2057_p5), %s2836_s8, 128, %s2841_s24, %s2843_s17, %s1997_s5, %s1997_s5, %s1998_s6  }
 0x283 PF: > { %p1883_p13 = scmp.ge.s32.totalorder %s1990_s15, 2  ;;  %s1637_s7 = sand.u32 1, %s1978_s12  }
 0x284   : > { %s1638_s9 = scalar_lea.sflag [#allocation3], %s1637_s7 }
 0x285   : > { %p1880_p0 = pnand %p1883_p13, %p2061_p6 }
 0x287   : > { %p1881_p1 = pneg %p1880_p0 }
 0x289   : > { %1973 = dma.done.wait (%p1881_p1), %s1638_s9, 128  }
 0x28a   : > { %1975 = vsyncadd (%p1881_p1), %s1638_s9, 4294967168  ;;  %p13_p2 = scmp.ge.s32.totalorder %s2044_s18, 4   ;;  %s2899_s12 = smov %s1982_s13 }
 0x28b   : > { %s2900_s13 = smov %s1986_s14  ;;  %s2901_s14 = smov %s2055_s21 }
 0x28c   : > { %s2902_s15 = smov %s2044_s18  ;;  %15 = sbr.rel (!%p13_p2) target bundleno = 3 (0x3), region = 73 }
 0x291   :  { %1643 = vsyncpa [#allocation3], 1 }
 0x292   :  { %1645 = vsyncpa [#allocation3 + $0x1], 1 }

</bundles_post_ra>
